<compile_context>
chip_gen: v7x
topology: tpu7x:2x2x1
jax: 0.10.0
libtpu: 0.0.40
codegen_flags: <defaults>
</compile_context>

<pallas_src>
import jax
import jax.numpy as jnp
from jax.experimental import pallas as pl
from jax.experimental.pallas import tpu as pltpu


# --------------------------------------------------------------------------
# kernel body helpers
# --------------------------------------------------------------------------
def _attn_gru_step(emb_ref, hid_ref, enc_ref, wc_ref, bc_ref,
                   wih_ref, whh_ref, bih_ref, bhh_ref,
                   newhid_ref, attnw_ref, *, num_layers, H):
    """Attention + attn_combine + ReLU + num_layers GRU step.

    Writes new_hidden / attn_weights and returns the top-layer GRU output
    (B, H) f32.
    """
    emb = emb_ref[...]                                     # (B, H)    bf16
    enc = enc_ref[...]                                     # (B, L, H) bf16
    h_top = hid_ref[num_layers - 1]                        # (B, H)    f32

    # q=1 attention scores on VPU/XLU (avoids B serial M=1 MXU matmuls).
    s = jnp.sum(enc.astype(jnp.float32) * h_top[:, None, :], axis=-1)   # (B, L)
    m = jnp.max(s, axis=-1, keepdims=True)
    e = jnp.exp(s - m)
    w = e / jnp.sum(e, axis=-1, keepdims=True)             # exact softmax
    attnw_ref[...] = w

    # Applied values: bf16 MXU batched contraction, f32 accumulation.
    attn_applied = jnp.einsum(
        "bql,blh->bqh", w[:, None, :].astype(jnp.bfloat16), enc,
        preferred_element_type=jnp.float32)[:, 0]          # (B, H) f32

    # Fused attn_combine: single (B, 2H) @ (2H, H) matmul + ReLU.
    xa = jnp.concatenate([emb, attn_applied.astype(jnp.bfloat16)], axis=-1)
    x = jnp.maximum(
        jnp.dot(xa, wc_ref[...], preferred_element_type=jnp.float32)
        + bc_ref[...], 0.0)                                # (B, H) f32

    # Multi-layer GRU, one time step, gate-fused: 2 bf16 matmuls per layer.
    # TODO(synk): for real configs H should be a multiple of 128 so the gate
    #             slices below are lane-aligned.
    for l in range(num_layers):                            # static unroll
        h_prev = hid_ref[l]                                # (B, H) f32
        xb = x.astype(jnp.bfloat16)
        hb = h_prev.astype(jnp.bfloat16)
        gi = jnp.dot(xb, wih_ref[l], preferred_element_type=jnp.float32) + bih_ref[l]
        gh = jnp.dot(hb, whh_ref[l], preferred_element_type=jnp.float32) + bhh_ref[l]
        r = jax.nn.sigmoid(gi[:, 0:H] + gh[:, 0:H])
        z = jax.nn.sigmoid(gi[:, H:2 * H] + gh[:, H:2 * H])
        n = jnp.tanh(gi[:, 2 * H:3 * H] + r * gh[:, 2 * H:3 * H])
        h_new = (1.0 - z) * n + z * h_prev
        newhid_ref[l] = h_new                              # direct per-layer store
        x = h_new
    return x


def make_kernel(num_layers, H, nv, tile_v):
    """Build the kernel for a static (num_layers, H, nv, tile_v) config."""
    if nv == 1:
        # Whole vocab in one lane-dense tile: single grid step, no scratch,
        # direct log_softmax (no online logsumexp / finalize pass).
        def kernel(emb_ref, hid_ref, enc_ref, wc_ref, bc_ref,
                   wih_ref, whh_ref, bih_ref, bhh_ref,
                   wout_ref, bout_ref,
                   logp_ref, newhid_ref, attnw_ref):
            x = _attn_gru_step(emb_ref, hid_ref, enc_ref, wc_ref, bc_ref,
                               wih_ref, whh_ref, bih_ref, bhh_ref,
                               newhid_ref, attnw_ref,
                               num_layers=num_layers, H=H)
            logits = (jnp.dot(x.astype(jnp.bfloat16), wout_ref[...],
                              preferred_element_type=jnp.float32)
                      + bout_ref[...])                     # (B, V) f32
            mx = jnp.max(logits, axis=-1, keepdims=True)
            lse = mx + jnp.log(jnp.sum(jnp.exp(logits - mx), axis=-1,
                                       keepdims=True))
            logp_ref[...] = logits - lse
        return kernel

    # Multi-tile vocab sweep: w_out/b_out streamed as lane-dense (H, tile_v)
    # blocks, raw logits written straight into the resident (B, V) output,
    # online logsumexp in tiny scratch, in-place normalization at the end.
    def kernel(emb_ref, hid_ref, enc_ref, wc_ref, bc_ref,
               wih_ref, whh_ref, bih_ref, bhh_ref,
               wout_ref, bout_ref,
               logp_ref, newhid_ref, attnw_ref,
               x_sc, m_sc, l_sc):
        j = pl.program_id(0)

        @pl.when(j == 0)
        def _prologue():
            # TODO(synk): on v7x with large GRU weights, move these operands to
            #             memory_space=pl.ANY + pl.run_scoped DMA (or a split
            #             pallas_call) so they don't stay VMEM-resident for the
            #             whole vocab sweep; single-buffer (pl.Buffered(1)) the
            #             invariant inputs if the VMEM report shows 2 buffers.
            x = _attn_gru_step(emb_ref, hid_ref, enc_ref, wc_ref, bc_ref,
                               wih_ref, whh_ref, bih_ref, bhh_ref,
                               newhid_ref, attnw_ref,
                               num_layers=num_layers, H=H)
            x_sc[...] = x                                  # keep f32 (no extra rounding)
            m_sc[...] = jnp.full_like(m_sc, -jnp.inf)
            l_sc[...] = jnp.zeros_like(l_sc)

        xb = x_sc[...].astype(jnp.bfloat16)
        logits = (jnp.dot(xb, wout_ref[...], preferred_element_type=jnp.float32)
                  + bout_ref[...])                         # (B, tile_v) f32

        # raw logits go straight into the resident output block (no dup buffer)
        start = pl.multiple_of(j * tile_v, tile_v)
        logp_ref[:, pl.ds(start, tile_v)] = logits

        m_prev = m_sc[...]
        m_new = jnp.maximum(m_prev, jnp.max(logits, axis=-1, keepdims=True))
        l_sc[...] = (l_sc[...] * jnp.exp(m_prev - m_new)
                     + jnp.sum(jnp.exp(logits - m_new), axis=-1, keepdims=True))
        m_sc[...] = m_new

        @pl.when(j == nv - 1)
        def _finalize():
            norm = m_sc[...] + jnp.log(l_sc[...])          # (B, 1)
            logp_ref[...] = logp_ref[...] - norm           # in-place RMW

    return kernel


# --------------------------------------------------------------------------
# wrapper-side sizing helpers
# --------------------------------------------------------------------------
def _const_spec(shape):
    nd = len(shape)
    return pl.BlockSpec(shape, lambda j, nd=nd: (0,) * nd)


def _vmem_budget():
    """Chip-aware VMEM budget (96 MiB-ish on v5e/v6e, ~48 MiB on v7x)."""
    try:
        cap = getattr(pltpu.get_tpu_info(), "vmem_capacity_bytes", None)
    except Exception:
        cap = None
    if not cap:
        cap = 64 * 1024 * 1024          # conservative fallback (v7x physical)
    return int(min(96 * 1024 * 1024, (cap * 3) // 4))


def _choose_tile_v(V, H, B, L, num_layers, budget):
    """Largest lane-dense vocab tile fitting the budget; prefer nv == 1."""
    fixed = 2 * (                       # conservatively assume 2 buffers each
        B * H * 2                       # embedded (bf16)
        + num_layers * B * H * 4        # hidden (f32)
        + B * L * H * 2                 # encoder outputs (bf16)
        + 2 * H * H * 2                 # w_combine (bf16)
        + 2 * num_layers * H * 3 * H * 2  # w_ih + w_hh (bf16)
        + 2 * num_layers * 3 * H * 4      # GRU biases (f32)
        + H * 4                         # b_combine
        + B * V * 4                     # resident log-prob output block
        + num_layers * B * H * 4        # new hidden output
        + B * L * 4                     # attention weights output
        + B * H * 4 + 2 * B * 4         # x / m / l scratch
    )

    def streamed(tv):                   # double-buffered w_out / b_out tiles
        return 2 * (H * tv * 2 + tv * 4)

    if fixed + streamed(V) <= budget or V % 128 != 0:
        return V                        # whole vocab in one tile
    for tv in (4096, 2048, 1024, 512, 256, 128):
        if V % tv == 0 and fixed + streamed(tv) <= budget:
            return tv
    # TODO(synk): two-pass recompute grid (v7x) when even (B, V) f32 overflows.
    return 128


# --------------------------------------------------------------------------
# forward
# --------------------------------------------------------------------------
def attn_decoder_forward(params, tokens, hidden, encoder_outputs, *,
                         force_tile_v=None):
    """tokens: (B, 1) int32; hidden: (num_layers, B, H); encoder_outputs: (L, B, H)."""
    num_layers, B0, H = hidden.shape
    L = encoder_outputs.shape[0]
    V = params["w_out"].shape[-1]

    # Wrapper glue: embedding gather (bf16 rows), batch-major bf16 encoder
    # layout, sublane batch padding.  Dropout is identity (eval mode); the
    # unused self.attn Linear(2H, max_length) of the PyTorch module is omitted.
    # TODO(synk): in-kernel embedding gather (scalar-prefetched token ids),
    #             multi-step decode fusion, and a parallel batch grid axis for
    #             v7x's 2 TensorCores are left out of this single-step kernel.
    embedded = params["embedding"][tokens[:, 0]]                     # (B0, H) bf16
    enc_bm = jnp.transpose(encoder_outputs, (1, 0, 2)).astype(jnp.bfloat16)

    pad_b = (-B0) % 8                                                # sublane pad
    if pad_b:
        embedded = jnp.pad(embedded, ((0, pad_b), (0, 0)))
        hidden_p = jnp.pad(hidden, ((0, 0), (0, pad_b), (0, 0)))
        enc_bm = jnp.pad(enc_bm, ((0, pad_b), (0, 0), (0, 0)))
    else:
        hidden_p = hidden
    B = B0 + pad_b

    vmem_budget = _vmem_budget()
    tile_v = (force_tile_v if force_tile_v is not None
              else _choose_tile_v(V, H, B, L, num_layers, vmem_budget))
    if V % tile_v != 0:
        tile_v = V
    nv = V // tile_v

    inputs = (embedded, hidden_p, enc_bm,
              params["w_combine"], params["b_combine"],
              params["w_ih"], params["w_hh"], params["b_ih"], params["b_hh"],
              params["w_out"], params["b_out"])

    in_specs = [_const_spec(x.shape) for x in inputs[:9]]
    in_specs += [pl.BlockSpec((H, tile_v), lambda j: (0, j)),        # stream w_out
                 pl.BlockSpec((1, tile_v), lambda j: (0, j))]        # stream b_out

    out_shapes = (
        jax.ShapeDtypeStruct((B, V), jnp.float32),                   # log-probs
        jax.ShapeDtypeStruct((num_layers, B, H), jnp.float32),       # new hidden
        jax.ShapeDtypeStruct((B, L), jnp.float32),                   # attn weights
    )
    out_specs = (_const_spec((B, V)),
                 _const_spec((num_layers, B, H)),
                 _const_spec((B, L)))

    if nv == 1:
        scratch_shapes = []
    else:
        scratch_shapes = [
            pltpu.VMEM((B, H), jnp.float32),   # GRU output (f32), reused per tile
            pltpu.VMEM((B, 1), jnp.float32),   # running max
            pltpu.VMEM((B, 1), jnp.float32),   # running sum(exp)
        ]

    logp, new_hidden, attn_w = pl.pallas_call(
        make_kernel(num_layers, H, nv, tile_v),
        grid=(nv,),
        in_specs=in_specs,
        out_specs=out_specs,
        out_shape=out_shapes,
        scratch_shapes=scratch_shapes,
        compiler_params=pltpu.CompilerParams(
            # vocab axis carries the online logsumexp + resident output block,
            # so it must stay sequential ("arbitrary").
            dimension_semantics=("arbitrary",),
            vmem_limit_bytes=vmem_budget),
    )(*inputs)

    if pad_b:
        logp = logp[:B0]
        new_hidden = new_hidden[:, :B0]
        attn_w = attn_w[:B0]

    # Match PyTorch return shapes: output (1, B, V), hidden (L, B, H),
    # attn_weights (B, L, 1).
    return logp[None], new_hidden, attn_w[:, :, None]


# --------------------------------------------------------------------------
# params + pure-JAX reference
# --------------------------------------------------------------------------
def init_params(key, hidden_size, output_size, num_layers):
    H, V = hidden_size, output_size
    ks = jax.random.split(key, 9)
    s = 0.1
    f32, bf16 = jnp.float32, jnp.bfloat16
    return dict(
        embedding=(jax.random.normal(ks[0], (V, H), f32) * s).astype(bf16),
        # attn_combine weight, rows = [embedded-part ; attn_applied-part]
        w_combine=(jax.random.normal(ks[1], (2 * H, H), f32) * s).astype(bf16),
        b_combine=jax.random.normal(ks[2], (1, H), f32) * s,
        # gate-fused GRU weights, columns in PyTorch gate order [r | z | n]
        w_ih=(jax.random.normal(ks[3], (num_layers, H, 3 * H), f32) * s).astype(bf16),
        w_hh=(jax.random.normal(ks[4], (num_layers, H, 3 * H), f32) * s).astype(bf16),
        b_ih=jax.random.normal(ks[5], (num_layers, 1, 3 * H), f32) * s,
        b_hh=jax.random.normal(ks[6], (num_layers, 1, 3 * H), f32) * s,
        w_out=(jax.random.normal(ks[7], (H, V), f32) * s).astype(bf16),
        b_out=jax.random.normal(ks[8], (1, V), f32) * s,
    )


def reference_forward(params, tokens, hidden, encoder_outputs):
    """Pure-JAX f32 reference mirroring the PyTorch forward (eval mode)."""
    hp = jax.lax.Precision.HIGHEST
    f32 = lambda a: a.astype(jnp.float32)
    H = hidden.shape[-1]

    embedded = f32(params["embedding"][tokens[:, 0]])                # (B, H)
    enc_s = jnp.transpose(encoder_outputs, (1, 0, 2))                # (B, L, H)
    score = jnp.einsum("blh,bh->bl", enc_s, hidden[-1], precision=hp)
    attn_w = jax.nn.softmax(score, axis=1)                           # (B, L)
    attn_applied = jnp.einsum("bl,blh->bh", attn_w, enc_s, precision=hp)

    xa = jnp.concatenate([embedded, attn_applied], axis=-1)
    x = jax.nn.relu(jnp.dot(xa, f32(params["w_combine"]), precision=hp)
                    + params["b_combine"][0])
    hs = []
    for l in range(hidden.shape[0]):
        h_prev = hidden[l]
        gi = jnp.dot(x, f32(params["w_ih"][l]), precision=hp) + params["b_ih"][l]
        gh = jnp.dot(h_prev, f32(params["w_hh"][l]), precision=hp) + params["b_hh"][l]
        r = jax.nn.sigmoid(gi[:, :H] + gh[:, :H])
        z = jax.nn.sigmoid(gi[:, H:2 * H] + gh[:, H:2 * H])
        n = jnp.tanh(gi[:, 2 * H:] + r * gh[:, 2 * H:])
        h_new = (1.0 - z) * n + z * h_prev
        hs.append(h_new)
        x = h_new
    logits = jnp.dot(x, f32(params["w_out"]), precision=hp) + params["b_out"][0]
    logp = jax.nn.log_softmax(logits, axis=-1)
    return logp[None], jnp.stack(hs), attn_w[:, :, None]


# --------------------------------------------------------------------------
if __name__ == "__main__":
    HIDDEN = 32       # hidden_size
    VOCAB = 1024      # output_size
    MAXLEN = 8        # max_length (encoder sequence length)
    LAYERS = 2        # num_layers
    BATCH = 4

    key = jax.random.PRNGKey(0)
    kp, kt, kh, ke = jax.random.split(key, 4)
    params = init_params(kp, HIDDEN, VOCAB, LAYERS)

    tokens = jax.random.randint(kt, (BATCH, 1), 0, VOCAB, dtype=jnp.int32)
    hidden0 = jax.random.normal(kh, (LAYERS, BATCH, HIDDEN), jnp.float32)
    encoder_outputs = jax.random.normal(ke, (MAXLEN, BATCH, HIDDEN), jnp.float32)

    ref_out, ref_hidden, ref_attn = reference_forward(params, tokens, hidden0,
                                                      encoder_outputs)

    # Default path: budget-derived tiling -> whole vocab in one tile (nv = 1).
    out, new_hidden, attn_w = attn_decoder_forward(params, tokens, hidden0,
                                                   encoder_outputs)
    jax.block_until_ready((out, new_hidden, attn_w))
    assert out.shape == (1, BATCH, VOCAB)
    assert new_hidden.shape == (LAYERS, BATCH, HIDDEN)
    assert attn_w.shape == (BATCH, MAXLEN, 1)
    assert jnp.allclose(out, ref_out, rtol=2e-2, atol=2e-2)
    assert jnp.allclose(new_hidden, ref_hidden, rtol=2e-2, atol=2e-2)
    assert jnp.allclose(attn_w, ref_attn, rtol=2e-2, atol=2e-2)

    # Forced multi-tile path (4 x 256): exercises the streamed w_out sweep,
    # online logsumexp and in-place normalization of the resident output.
    out2, new_hidden2, attn_w2 = attn_decoder_forward(
        params, tokens, hidden0, encoder_outputs, force_tile_v=256)
    jax.block_until_ready((out2, new_hidden2, attn_w2))
    assert jnp.allclose(out2, ref_out, rtol=2e-2, atol=2e-2)
    assert jnp.allclose(new_hidden2, ref_hidden, rtol=2e-2, atol=2e-2)
    assert jnp.allclose(attn_w2, ref_attn, rtol=2e-2, atol=2e-2)

    print("KERNEL_OK")
</pallas_src>

<mosaic_0001>
module attributes {stable_mosaic.version = 11 : i64} {
  func.func @kernel(%arg0: i32, %arg1: memref<8x32xbf16, #tpu.memory_space<vmem>>, %arg2: memref<2x8x32xf32, #tpu.memory_space<vmem>>, %arg3: memref<8x8x32xbf16, #tpu.memory_space<vmem>>, %arg4: memref<64x32xbf16, #tpu.memory_space<vmem>>, %arg5: memref<1x32xf32, #tpu.memory_space<vmem>>, %arg6: memref<2x32x96xbf16, #tpu.memory_space<vmem>>, %arg7: memref<2x32x96xbf16, #tpu.memory_space<vmem>>, %arg8: memref<2x1x96xf32, #tpu.memory_space<vmem>>, %arg9: memref<2x1x96xf32, #tpu.memory_space<vmem>>, %arg10: memref<32x1024xbf16, #tpu.memory_space<vmem>>, %arg11: memref<1x1024xf32, #tpu.memory_space<vmem>>, %arg12: memref<8x1024xf32, #tpu.memory_space<vmem>>, %arg13: memref<2x8x32xf32, #tpu.memory_space<vmem>>, %arg14: memref<8x8xf32, #tpu.memory_space<vmem>>) attributes {dimension_semantics = [#tpu.dimension_semantics<arbitrary>], iteration_bounds = array<i64: 1>, scalar_prefetch = 0 : i64, scratch_operands = 0 : i64, tpu.core_type = #tpu.core_type<tc>, window_params = [{pipeline_mode = #tpu.pipeline_mode<synchronous>, transform_indices = @transform_0, window_bounds = array<i64: 8, 32>}, {pipeline_mode = #tpu.pipeline_mode<synchronous>, transform_indices = @transform_1, window_bounds = array<i64: 2, 8, 32>}, {pipeline_mode = #tpu.pipeline_mode<synchronous>, transform_indices = @transform_2, window_bounds = array<i64: 8, 8, 32>}, {pipeline_mode = #tpu.pipeline_mode<synchronous>, transform_indices = @transform_3, window_bounds = array<i64: 64, 32>}, {pipeline_mode = #tpu.pipeline_mode<synchronous>, transform_indices = @transform_4, window_bounds = array<i64: 1, 32>}, {pipeline_mode = #tpu.pipeline_mode<synchronous>, transform_indices = @transform_5, window_bounds = array<i64: 2, 32, 96>}, {pipeline_mode = #tpu.pipeline_mode<synchronous>, transform_indices = @transform_6, window_bounds = array<i64: 2, 32, 96>}, {pipeline_mode = #tpu.pipeline_mode<synchronous>, transform_indices = @transform_7, window_bounds = array<i64: 2, 1, 96>}, {pipeline_mode = #tpu.pipeline_mode<synchronous>, transform_indices = @transform_8, window_bounds = array<i64: 2, 1, 96>}, {transform_indices = @transform_9, window_bounds = array<i64: 32, 1024>}, {transform_indices = @transform_10, window_bounds = array<i64: 1, 1024>}, {pipeline_mode = #tpu.pipeline_mode<synchronous>, transform_indices = @transform_11, window_bounds = array<i64: 8, 1024>}, {pipeline_mode = #tpu.pipeline_mode<synchronous>, transform_indices = @transform_12, window_bounds = array<i64: 2, 8, 32>}, {pipeline_mode = #tpu.pipeline_mode<synchronous>, transform_indices = @transform_13, window_bounds = array<i64: 8, 8>}]} {
    %c0 = arith.constant 0 : index
    %c0_0 = arith.constant 0 : index
    %0 = vector.load %arg1[%c0, %c0_0] : memref<8x32xbf16, #tpu.memory_space<vmem>>, vector<8x32xbf16>
    %c0_1 = arith.constant 0 : index
    %c0_2 = arith.constant 0 : index
    %c0_3 = arith.constant 0 : index
    %1 = vector.load %arg3[%c0_1, %c0_2, %c0_3] : memref<8x8x32xbf16, #tpu.memory_space<vmem>>, vector<8x8x32xbf16>
    %c1 = arith.constant 1 : index
    %c0_4 = arith.constant 0 : index
    %c0_5 = arith.constant 0 : index
    %2 = vector.load %arg2[%c1, %c0_4, %c0_5] : memref<2x8x32xf32, #tpu.memory_space<vmem>>, vector<1x8x32xf32>
    %3 = vector.shape_cast %2 : vector<1x8x32xf32> to vector<8x32xf32>
    %4 = arith.extf %1 : vector<8x8x32xbf16> to vector<8x8x32xf32>
    %5 = vector.shape_cast %3 : vector<8x32xf32> to vector<8x1x32xf32>
    %6 = vector.broadcast %5 : vector<8x1x32xf32> to vector<8x8x32xf32>
    %7 = arith.mulf %4, %6 : vector<8x8x32xf32>
    %cst = arith.constant dense<0.000000e+00> : vector<8x8xf32>
    %8 = vector.multi_reduction <add>, %7, %cst [2] : vector<8x8x32xf32> to vector<8x8xf32>
    %cst_6 = arith.constant dense<0xFF800000> : vector<8xf32>
    %9 = vector.multi_reduction <maximumf>, %8, %cst_6 [1] : vector<8x8xf32> to vector<8xf32>
    %10 = vector.shape_cast %9 : vector<8xf32> to vector<8x1xf32>
    %11 = vector.broadcast %10 : vector<8x1xf32> to vector<8x8xf32>
    %12 = arith.subf %8, %11 : vector<8x8xf32>
    %13 = math.exp %12 : vector<8x8xf32>
    %cst_7 = arith.constant dense<0.000000e+00> : vector<8xf32>
    %14 = vector.multi_reduction <add>, %13, %cst_7 [1] : vector<8x8xf32> to vector<8xf32>
    %15 = vector.shape_cast %14 : vector<8xf32> to vector<8x1xf32>
    %16 = vector.broadcast %15 : vector<8x1xf32> to vector<8x8xf32>
    %17 = arith.divf %13, %16 : vector<8x8xf32>
    %c0_8 = arith.constant 0 : index
    %c0_9 = arith.constant 0 : index
    %18 = vector.load %arg14[%c0_8, %c0_9] : memref<8x8xf32, #tpu.memory_space<vmem>>, vector<8x8xf32>
    tpu.vector_store %arg14[%c0_8, %c0_9], %17 {strides = array<i32>} : memref<8x8xf32, #tpu.memory_space<vmem>>, vector<8x8xf32>,
    %19 = vector.shape_cast %17 : vector<8x8xf32> to vector<8x1x8xf32>
    %20 = arith.truncf %19 : vector<8x1x8xf32> to vector<8x1x8xbf16>
    "tpu.trace_start"() <{level = 10 : i32, message = "bql,blh->bqh"}> : () -> ()
    %cst_10 = arith.constant dense<0.000000e+00> : vector<8x1x32xf32>
    %21 = tpu.matmul %20, %1, %cst_10 {dimension_numbers = #tpu.dot_dimension_numbers<[2], [1], [1], [2], [0, 0, 0, 1, 1, 2], [0], [0]>} : vector<8x1x8xbf16>, vector<8x8x32xbf16>, vector<8x1x32xf32> -> vector<8x1x32xf32>
    "tpu.trace_stop"() : () -> ()
    %22 = vector.shape_cast %21 : vector<8x1x32xf32> to vector<8x32xf32>
    %23 = arith.truncf %22 : vector<8x32xf32> to vector<8x32xbf16>
    %24 = tpu.concatenate %0, %23 in 1 : vector<8x32xbf16>, vector<8x32xbf16> -> vector<8x64xbf16>
    %c0_11 = arith.constant 0 : index
    %c0_12 = arith.constant 0 : index
    %25 = vector.load %arg4[%c0_11, %c0_12] : memref<64x32xbf16, #tpu.memory_space<vmem>>, vector<64x32xbf16>
    %cst_13 = arith.constant dense<0.000000e+00> : vector<8x32xf32>
    %26 = tpu.matmul %24, %25, %cst_13 {dimension_numbers = #tpu.dot_dimension_numbers<[1], [0], [0], [1], [0, 0, 1, 1], [], []>} : vector<8x64xbf16>, vector<64x32xbf16>, vector<8x32xf32> -> vector<8x32xf32>
    %c0_14 = arith.constant 0 : index
    %c0_15 = arith.constant 0 : index
    %27 = vector.load %arg5[%c0_14, %c0_15] : memref<1x32xf32, #tpu.memory_space<vmem>>, vector<1x32xf32>
    %28 = vector.broadcast %27 : vector<1x32xf32> to vector<8x32xf32>
    %29 = arith.addf %26, %28 : vector<8x32xf32>
    %cst_16 = arith.constant 0.000000e+00 : f32
    %30 = vector.broadcast %cst_16 : f32 to vector<8x32xf32>
    %31 = arith.maximumf %29, %30 : vector<8x32xf32>
    %c0_17 = arith.constant 0 : index
    %c0_18 = arith.constant 0 : index
    %c0_19 = arith.constant 0 : index
    %32 = vector.load %arg2[%c0_17, %c0_18, %c0_19] : memref<2x8x32xf32, #tpu.memory_space<vmem>>, vector<1x8x32xf32>
    %33 = vector.shape_cast %32 : vector<1x8x32xf32> to vector<8x32xf32>
    %34 = arith.truncf %31 : vector<8x32xf32> to vector<8x32xbf16>
    %35 = arith.truncf %33 : vector<8x32xf32> to vector<8x32xbf16>
    %c0_20 = arith.constant 0 : index
    %c0_21 = arith.constant 0 : index
    %c0_22 = arith.constant 0 : index
    %36 = vector.load %arg6[%c0_20, %c0_21, %c0_22] : memref<2x32x96xbf16, #tpu.memory_space<vmem>>, vector<1x32x96xbf16>
    %37 = vector.shape_cast %36 : vector<1x32x96xbf16> to vector<32x96xbf16>
    %cst_23 = arith.constant dense<0.000000e+00> : vector<8x96xf32>
    %38 = tpu.matmul %34, %37, %cst_23 {dimension_numbers = #tpu.dot_dimension_numbers<[1], [0], [0], [1], [0, 0, 1, 1], [], []>} : vector<8x32xbf16>, vector<32x96xbf16>, vector<8x96xf32> -> vector<8x96xf32>
    %c0_24 = arith.constant 0 : index
    %c0_25 = arith.constant 0 : index
    %c0_26 = arith.constant 0 : index
    %39 = vector.load %arg8[%c0_24, %c0_25, %c0_26] : memref<2x1x96xf32, #tpu.memory_space<vmem>>, vector<1x1x96xf32>
    %40 = vector.shape_cast %39 : vector<1x1x96xf32> to vector<1x96xf32>
    %41 = vector.broadcast %40 : vector<1x96xf32> to vector<8x96xf32>
    %42 = arith.addf %38, %41 : vector<8x96xf32>
    %c0_27 = arith.constant 0 : index
    %c0_28 = arith.constant 0 : index
    %c0_29 = arith.constant 0 : index
    %43 = vector.load %arg7[%c0_27, %c0_28, %c0_29] : memref<2x32x96xbf16, #tpu.memory_space<vmem>>, vector<1x32x96xbf16>
    %44 = vector.shape_cast %43 : vector<1x32x96xbf16> to vector<32x96xbf16>
    %cst_30 = arith.constant dense<0.000000e+00> : vector<8x96xf32>
    %45 = tpu.matmul %35, %44, %cst_30 {dimension_numbers = #tpu.dot_dimension_numbers<[1], [0], [0], [1], [0, 0, 1, 1], [], []>} : vector<8x32xbf16>, vector<32x96xbf16>, vector<8x96xf32> -> vector<8x96xf32>
    %c0_31 = arith.constant 0 : index
    %c0_32 = arith.constant 0 : index
    %c0_33 = arith.constant 0 : index
    %46 = vector.load %arg9[%c0_31, %c0_32, %c0_33] : memref<2x1x96xf32, #tpu.memory_space<vmem>>, vector<1x1x96xf32>
    %47 = vector.shape_cast %46 : vector<1x1x96xf32> to vector<1x96xf32>
    %48 = vector.broadcast %47 : vector<1x96xf32> to vector<8x96xf32>
    %49 = arith.addf %45, %48 : vector<8x96xf32>
    %50 = vector.extract_strided_slice %42 {offsets = [0, 0], sizes = [8, 32], strides = [1, 1]} : vector<8x96xf32> to vector<8x32xf32>
    %51 = vector.extract_strided_slice %49 {offsets = [0, 0], sizes = [8, 32], strides = [1, 1]} : vector<8x96xf32> to vector<8x32xf32>
    %52 = arith.addf %50, %51 : vector<8x32xf32>
    %53 = arith.negf %52 : vector<8x32xf32>
    %54 = math.exp %53 : vector<8x32xf32>
    %cst_34 = arith.constant 1.000000e+00 : f32
    %55 = vector.broadcast %cst_34 : f32 to vector<8x32xf32>
    %56 = arith.addf %55, %54 : vector<8x32xf32>
    %57 = arith.divf %55, %56 : vector<8x32xf32>
    %58 = vector.extract_strided_slice %42 {offsets = [0, 32], sizes = [8, 32], strides = [1, 1]} : vector<8x96xf32> to vector<8x32xf32>
    %59 = vector.extract_strided_slice %49 {offsets = [0, 32], sizes = [8, 32], strides = [1, 1]} : vector<8x96xf32> to vector<8x32xf32>
    %60 = arith.addf %58, %59 : vector<8x32xf32>
    %61 = arith.negf %60 : vector<8x32xf32>
    %62 = math.exp %61 : vector<8x32xf32>
    %cst_35 = arith.constant 1.000000e+00 : f32
    %63 = vector.broadcast %cst_35 : f32 to vector<8x32xf32>
    %64 = arith.addf %63, %62 : vector<8x32xf32>
    %65 = arith.divf %63, %64 : vector<8x32xf32>
    %66 = vector.extract_strided_slice %42 {offsets = [0, 64], sizes = [8, 32], strides = [1, 1]} : vector<8x96xf32> to vector<8x32xf32>
    %67 = vector.extract_strided_slice %49 {offsets = [0, 64], sizes = [8, 32], strides = [1, 1]} : vector<8x96xf32> to vector<8x32xf32>
    %68 = arith.mulf %57, %67 : vector<8x32xf32>
    %69 = arith.addf %66, %68 : vector<8x32xf32>
    %70 = math.tanh %69 : vector<8x32xf32>
    %cst_36 = arith.constant 1.000000e+00 : f32
    %71 = vector.broadcast %cst_36 : f32 to vector<8x32xf32>
    %72 = arith.subf %71, %65 : vector<8x32xf32>
    %73 = arith.mulf %72, %70 : vector<8x32xf32>
    %74 = arith.mulf %65, %33 : vector<8x32xf32>
    %75 = arith.addf %73, %74 : vector<8x32xf32>
    %c0_37 = arith.constant 0 : index
    %c0_38 = arith.constant 0 : index
    %c0_39 = arith.constant 0 : index
    %76 = vector.load %arg13[%c0_37, %c0_38, %c0_39] : memref<2x8x32xf32, #tpu.memory_space<vmem>>, vector<1x8x32xf32>
    %77 = vector.shape_cast %76 : vector<1x8x32xf32> to vector<8x32xf32>
    %78 = vector.shape_cast %75 : vector<8x32xf32> to vector<1x8x32xf32>
    tpu.vector_store %arg13[%c0_37, %c0_38, %c0_39], %78 {strides = array<i32>} : memref<2x8x32xf32, #tpu.memory_space<vmem>>, vector<1x8x32xf32>,
    %c1_40 = arith.constant 1 : index
    %c0_41 = arith.constant 0 : index
    %c0_42 = arith.constant 0 : index
    %79 = vector.load %arg2[%c1_40, %c0_41, %c0_42] : memref<2x8x32xf32, #tpu.memory_space<vmem>>, vector<1x8x32xf32>
    %80 = vector.shape_cast %79 : vector<1x8x32xf32> to vector<8x32xf32>
    %81 = arith.truncf %75 : vector<8x32xf32> to vector<8x32xbf16>
    %82 = arith.truncf %80 : vector<8x32xf32> to vector<8x32xbf16>
    %c1_43 = arith.constant 1 : index
    %c0_44 = arith.constant 0 : index
    %c0_45 = arith.constant 0 : index
    %83 = vector.load %arg6[%c1_43, %c0_44, %c0_45] : memref<2x32x96xbf16, #tpu.memory_space<vmem>>, vector<1x32x96xbf16>
    %84 = vector.shape_cast %83 : vector<1x32x96xbf16> to vector<32x96xbf16>
    %cst_46 = arith.constant dense<0.000000e+00> : vector<8x96xf32>
    %85 = tpu.matmul %81, %84, %cst_46 {dimension_numbers = #tpu.dot_dimension_numbers<[1], [0], [0], [1], [0, 0, 1, 1], [], []>} : vector<8x32xbf16>, vector<32x96xbf16>, vector<8x96xf32> -> vector<8x96xf32>
    %c1_47 = arith.constant 1 : index
    %c0_48 = arith.constant 0 : index
    %c0_49 = arith.constant 0 : index
    %86 = vector.load %arg8[%c1_47, %c0_48, %c0_49] : memref<2x1x96xf32, #tpu.memory_space<vmem>>, vector<1x1x96xf32>
    %87 = vector.shape_cast %86 : vector<1x1x96xf32> to vector<1x96xf32>
    %88 = vector.broadcast %87 : vector<1x96xf32> to vector<8x96xf32>
    %89 = arith.addf %85, %88 : vector<8x96xf32>
    %c1_50 = arith.constant 1 : index
    %c0_51 = arith.constant 0 : index
    %c0_52 = arith.constant 0 : index
    %90 = vector.load %arg7[%c1_50, %c0_51, %c0_52] : memref<2x32x96xbf16, #tpu.memory_space<vmem>>, vector<1x32x96xbf16>
    %91 = vector.shape_cast %90 : vector<1x32x96xbf16> to vector<32x96xbf16>
    %cst_53 = arith.constant dense<0.000000e+00> : vector<8x96xf32>
    %92 = tpu.matmul %82, %91, %cst_53 {dimension_numbers = #tpu.dot_dimension_numbers<[1], [0], [0], [1], [0, 0, 1, 1], [], []>} : vector<8x32xbf16>, vector<32x96xbf16>, vector<8x96xf32> -> vector<8x96xf32>
    %c1_54 = arith.constant 1 : index
    %c0_55 = arith.constant 0 : index
    %c0_56 = arith.constant 0 : index
    %93 = vector.load %arg9[%c1_54, %c0_55, %c0_56] : memref<2x1x96xf32, #tpu.memory_space<vmem>>, vector<1x1x96xf32>
    %94 = vector.shape_cast %93 : vector<1x1x96xf32> to vector<1x96xf32>
    %95 = vector.broadcast %94 : vector<1x96xf32> to vector<8x96xf32>
    %96 = arith.addf %92, %95 : vector<8x96xf32>
    %97 = vector.extract_strided_slice %89 {offsets = [0, 0], sizes = [8, 32], strides = [1, 1]} : vector<8x96xf32> to vector<8x32xf32>
    %98 = vector.extract_strided_slice %96 {offsets = [0, 0], sizes = [8, 32], strides = [1, 1]} : vector<8x96xf32> to vector<8x32xf32>
    %99 = arith.addf %97, %98 : vector<8x32xf32>
    %100 = arith.negf %99 : vector<8x32xf32>
    %101 = math.exp %100 : vector<8x32xf32>
    %cst_57 = arith.constant 1.000000e+00 : f32
    %102 = vector.broadcast %cst_57 : f32 to vector<8x32xf32>
    %103 = arith.addf %102, %101 : vector<8x32xf32>
    %104 = arith.divf %102, %103 : vector<8x32xf32>
    %105 = vector.extract_strided_slice %89 {offsets = [0, 32], sizes = [8, 32], strides = [1, 1]} : vector<8x96xf32> to vector<8x32xf32>
    %106 = vector.extract_strided_slice %96 {offsets = [0, 32], sizes = [8, 32], strides = [1, 1]} : vector<8x96xf32> to vector<8x32xf32>
    %107 = arith.addf %105, %106 : vector<8x32xf32>
    %108 = arith.negf %107 : vector<8x32xf32>
    %109 = math.exp %108 : vector<8x32xf32>
    %cst_58 = arith.constant 1.000000e+00 : f32
    %110 = vector.broadcast %cst_58 : f32 to vector<8x32xf32>
    %111 = arith.addf %110, %109 : vector<8x32xf32>
    %112 = arith.divf %110, %111 : vector<8x32xf32>
    %113 = vector.extract_strided_slice %89 {offsets = [0, 64], sizes = [8, 32], strides = [1, 1]} : vector<8x96xf32> to vector<8x32xf32>
    %114 = vector.extract_strided_slice %96 {offsets = [0, 64], sizes = [8, 32], strides = [1, 1]} : vector<8x96xf32> to vector<8x32xf32>
    %115 = arith.mulf %104, %114 : vector<8x32xf32>
    %116 = arith.addf %113, %115 : vector<8x32xf32>
    %117 = math.tanh %116 : vector<8x32xf32>
    %cst_59 = arith.constant 1.000000e+00 : f32
    %118 = vector.broadcast %cst_59 : f32 to vector<8x32xf32>
    %119 = arith.subf %118, %112 : vector<8x32xf32>
    %120 = arith.mulf %119, %117 : vector<8x32xf32>
    %121 = arith.mulf %112, %80 : vector<8x32xf32>
    %122 = arith.addf %120, %121 : vector<8x32xf32>
    %c1_60 = arith.constant 1 : index
    %c0_61 = arith.constant 0 : index
    %c0_62 = arith.constant 0 : index
    %123 = vector.load %arg13[%c1_60, %c0_61, %c0_62] : memref<2x8x32xf32, #tpu.memory_space<vmem>>, vector<1x8x32xf32>
    %124 = vector.shape_cast %123 : vector<1x8x32xf32> to vector<8x32xf32>
    %125 = vector.shape_cast %122 : vector<8x32xf32> to vector<1x8x32xf32>
    tpu.vector_store %arg13[%c1_60, %c0_61, %c0_62], %125 {strides = array<i32>} : memref<2x8x32xf32, #tpu.memory_space<vmem>>, vector<1x8x32xf32>,
    %126 = arith.truncf %122 : vector<8x32xf32> to vector<8x32xbf16>
    %c0_63 = arith.constant 0 : index
    %c0_64 = arith.constant 0 : index
    %127 = vector.load %arg10[%c0_63, %c0_64] : memref<32x1024xbf16, #tpu.memory_space<vmem>>, vector<32x1024xbf16>
    %cst_65 = arith.constant dense<0.000000e+00> : vector<8x1024xf32>
    %128 = tpu.matmul %126, %127, %cst_65 {dimension_numbers = #tpu.dot_dimension_numbers<[1], [0], [0], [1], [0, 0, 1, 1], [], []>} : vector<8x32xbf16>, vector<32x1024xbf16>, vector<8x1024xf32> -> vector<8x1024xf32>
    %c0_66 = arith.constant 0 : index
    %c0_67 = arith.constant 0 : index
    %129 = vector.load %arg11[%c0_66, %c0_67] : memref<1x1024xf32, #tpu.memory_space<vmem>>, vector<1x1024xf32>
    %130 = vector.broadcast %129 : vector<1x1024xf32> to vector<8x1024xf32>
    %131 = arith.addf %128, %130 : vector<8x1024xf32>
    %cst_68 = arith.constant dense<0xFF800000> : vector<8xf32>
    %132 = vector.multi_reduction <maximumf>, %131, %cst_68 [1] : vector<8x1024xf32> to vector<8xf32>
    %133 = vector.shape_cast %132 : vector<8xf32> to vector<8x1xf32>
    %134 = vector.broadcast %133 : vector<8x1xf32> to vector<8x1024xf32>
    %135 = arith.subf %131, %134 : vector<8x1024xf32>
    %136 = math.exp %135 : vector<8x1024xf32>
    %cst_69 = arith.constant dense<0.000000e+00> : vector<8xf32>
    %137 = vector.multi_reduction <add>, %136, %cst_69 [1] : vector<8x1024xf32> to vector<8xf32>
    %138 = vector.shape_cast %137 : vector<8xf32> to vector<8x1xf32>
    %139 = math.log %138 : vector<8x1xf32>
    %140 = arith.addf %133, %139 : vector<8x1xf32>
    %141 = vector.broadcast %140 : vector<8x1xf32> to vector<8x1024xf32>
    %142 = arith.subf %131, %141 : vector<8x1024xf32>
    %c0_70 = arith.constant 0 : index
    %c0_71 = arith.constant 0 : index
    %143 = vector.load %arg12[%c0_70, %c0_71] : memref<8x1024xf32, #tpu.memory_space<vmem>>, vector<8x1024xf32>
    tpu.vector_store %arg12[%c0_70, %c0_71], %142 {strides = array<i32>} : memref<8x1024xf32, #tpu.memory_space<vmem>>, vector<8x1024xf32>,
    return
  }
  func.func @transform_0(%arg0: i32) -> (i32, i32) {
    %c0_i32 = arith.constant 0 : i32
    %c0_i32_0 = arith.constant 0 : i32
    %c0_i32_1 = arith.constant 0 : i32
    return %c0_i32, %c0_i32_0 : i32, i32
  }
  func.func @transform_1(%arg0: i32) -> (i32, i32, i32) {
    %c0_i32 = arith.constant 0 : i32
    %c0_i32_0 = arith.constant 0 : i32
    %c0_i32_1 = arith.constant 0 : i32
    %c0_i32_2 = arith.constant 0 : i32
    return %c0_i32, %c0_i32_0, %c0_i32_1 : i32, i32, i32
  }
  func.func @transform_2(%arg0: i32) -> (i32, i32, i32) {
    %c0_i32 = arith.constant 0 : i32
    %c0_i32_0 = arith.constant 0 : i32
    %c0_i32_1 = arith.constant 0 : i32
    %c0_i32_2 = arith.constant 0 : i32
    return %c0_i32, %c0_i32_0, %c0_i32_1 : i32, i32, i32
  }
  func.func @transform_3(%arg0: i32) -> (i32, i32) {
    %c0_i32 = arith.constant 0 : i32
    %c0_i32_0 = arith.constant 0 : i32
    %c0_i32_1 = arith.constant 0 : i32
    return %c0_i32, %c0_i32_0 : i32, i32
  }
  func.func @transform_4(%arg0: i32) -> (i32, i32) {
    %c0_i32 = arith.constant 0 : i32
    %c0_i32_0 = arith.constant 0 : i32
    %c0_i32_1 = arith.constant 0 : i32
    return %c0_i32, %c0_i32_0 : i32, i32
  }
  func.func @transform_5(%arg0: i32) -> (i32, i32, i32) {
    %c0_i32 = arith.constant 0 : i32
    %c0_i32_0 = arith.constant 0 : i32
    %c0_i32_1 = arith.constant 0 : i32
    %c0_i32_2 = arith.constant 0 : i32
    return %c0_i32, %c0_i32_0, %c0_i32_1 : i32, i32, i32
  }
  func.func @transform_6(%arg0: i32) -> (i32, i32, i32) {
    %c0_i32 = arith.constant 0 : i32
    %c0_i32_0 = arith.constant 0 : i32
    %c0_i32_1 = arith.constant 0 : i32
    %c0_i32_2 = arith.constant 0 : i32
    return %c0_i32, %c0_i32_0, %c0_i32_1 : i32, i32, i32
  }
  func.func @transform_7(%arg0: i32) -> (i32, i32, i32) {
    %c0_i32 = arith.constant 0 : i32
    %c0_i32_0 = arith.constant 0 : i32
    %c0_i32_1 = arith.constant 0 : i32
    %c0_i32_2 = arith.constant 0 : i32
    return %c0_i32, %c0_i32_0, %c0_i32_1 : i32, i32, i32
  }
  func.func @transform_8(%arg0: i32) -> (i32, i32, i32) {
    %c0_i32 = arith.constant 0 : i32
    %c0_i32_0 = arith.constant 0 : i32
    %c0_i32_1 = arith.constant 0 : i32
    %c0_i32_2 = arith.constant 0 : i32
    return %c0_i32, %c0_i32_0, %c0_i32_1 : i32, i32, i32
  }
  func.func @transform_9(%arg0: i32) -> (i32, i32) {
    %c0_i32 = arith.constant 0 : i32
    %c0_i32_0 = arith.constant 0 : i32
    return %c0_i32, %arg0 : i32, i32
  }
  func.func @transform_10(%arg0: i32) -> (i32, i32) {
    %c0_i32 = arith.constant 0 : i32
    %c0_i32_0 = arith.constant 0 : i32
    return %c0_i32, %arg0 : i32, i32
  }
  func.func @transform_11(%arg0: i32) -> (i32, i32) {
    %c0_i32 = arith.constant 0 : i32
    %c0_i32_0 = arith.constant 0 : i32
    %c0_i32_1 = arith.constant 0 : i32
    return %c0_i32, %c0_i32_0 : i32, i32
  }
  func.func @transform_12(%arg0: i32) -> (i32, i32, i32) {
    %c0_i32 = arith.constant 0 : i32
    %c0_i32_0 = arith.constant 0 : i32
    %c0_i32_1 = arith.constant 0 : i32
    %c0_i32_2 = arith.constant 0 : i32
    return %c0_i32, %c0_i32_0, %c0_i32_1 : i32, i32, i32
  }
  func.func @transform_13(%arg0: i32) -> (i32, i32) {
    %c0_i32 = arith.constant 0 : i32
    %c0_i32_0 = arith.constant 0 : i32
    %c0_i32_1 = arith.constant 0 : i32
    return %c0_i32, %c0_i32_0 : i32, i32
  }
}

</mosaic_0001>

<bundles_post_ra>
// kernel: tpu_custom_call.1
= control target key start
LH: loop header
LB: loop body
LE: loop exit
PB: predicated region body
PF: predicated region fallthrough
CT: control target
= control target key end

     0   :  { %19 = vsyncpa [#allocation3], 0  ;;  %s3049_s0 = inlined_call_operand.hbm [shape: bf16[8,32], index: 0, kind: input, shape index: {}]   ;;  %s3050_s1 = inlined_call_operand.hbm [shape: f32[2,8,32], index: 1, kind: input, shape index: {}]   ;;  %s3051_s2 = inlined_call_operand.vmem [shape: bf16[8,8,32], index: 2, kind: input, shape index: {}]   ;;  %s3052_s3 = inlined_call_operand.vmem [shape: bf16[64,32], index: 3, kind: input, shape index: {}]   ;;  %s3053_s4 = inlined_call_operand.hbm [shape: f32[1,32], index: 4, kind: input, shape index: {}]   ;;  %s3054_s5 = inlined_call_operand.vmem [shape: bf16[2,32,96], index: 5, kind: input, shape index: {}]   ;;  %s3055_s6 = inlined_call_operand.hbm [shape: bf16[2,32,96], index: 6, kind: input, shape index: {}]   ;;  %s3056_s7 = inlined_call_operand.vmem [shape: f32[2,1,96], index: 7, kind: input, shape index: {}]   ;;  %s3057_s8 = inlined_call_operand.vmem [shape: f32[2,1,96], index: 8, kind: input, shape index: {}]   ;;  %s3058_s9 = inlined_call_operand.hbm [shape: bf16[32,1024], index: 9, kind: input, shape index: {}]   ;;  %s3059_s10 = inlined_call_operand.vmem [shape: f32[1,1024], index: 10, kind: input, shape index: {}]   ;;  %s3060_s11 = inlined_call_operand.hbm [shape: f32[8,1024], index: 11, kind: output, shape index: {0}]   ;;  %s3061_s12 = inlined_call_operand.hbm [shape: f32[2,8,32], index: 12, kind: output, shape index: {1}]   ;;  %s3062_s13 = inlined_call_operand.hbm [shape: f32[8,8], index: 13, kind: output, shape index: {2}]  }
   0x1   :  { %20 = vsyncpa [#allocation6], 0 }
   0x2   :  { %21 = vsyncpa [#allocation9], 0 }
   0x3   :  { %22 = vsyncpa [#allocation4], 0 }
   0x4   :  { %23 = vsyncpa [#allocation13], 0  ;;  %s2395_s25 = smov [#allocation5]   ;;  %s2209_s29 = scalar_lea.hbm %s3050_s1, 256 }
   0x5   :  { %s39_s26 = sshll.u32 %s2395_s25, 4  ;;  %p2210_p0 = scmp.ne.s32.totalorder %s3050_s1, %s2209_s29  ;;  %s40_s26 = int_to_ptr.vmem [resolvable:$true] %s39_s26 }
   0x6   :  { %p2213_p1 = scmp.lt.u32.totalorder %s2209_s29, %s3050_s1 }
   0x8   :  { %p2215_p2 = pnand %p2213_p1, %p2210_p0 }
   0xa   :  { %2218 = shalt.err (!%p2215_p2)
}
   0xb   :  { %s2219_s17 = scalar_lea.vmem %s40_s26, 256  ;;  %p2224_p4 = scmp.lt.s32.totalorder %s40_s26, %s40_s26 }
   0xc   :  { %p2220_p3 = scmp.ne.s32.totalorder %s40_s26, %s2219_s17  ;;  %p2225_p5 = scmp.lt.s32.totalorder %s2219_s17, %s2219_s17 }
   0xe   :  { %p2226_p6 = por %p2225_p5, %p2224_p4 }
  0x10   :  { %p2227_p7 = pnand %p2226_p6, %p2220_p3 }
  0x12   :  { %2230 = shalt.err (!%p2227_p7)
}
  0x13   :  { %s2396_s18 = smov 128   ;;  %s2397_s19 = smov 8  }
  0x14   :  { %45 = dma.hbm_to_vmem [thread:$0]  %s3050_s1, 256, %s40_s26, [#allocation6], %s2396_s18, %s2396_s18, %s2397_s19  }
  0x15   :  { %s2398_s22 = smov [#allocation8]   ;;  %s2231_s27 = scalar_lea.hbm %s3055_s6, 512 }
  0x16   :  { %s67_s23 = sshll.u32 %s2398_s22, 4  ;;  %p2232_p8 = scmp.ne.s32.totalorder %s3055_s6, %s2231_s27  ;;  %s68_s23 = int_to_ptr.vmem [resolvable:$true] %s67_s23 }
  0x17   :  { %p2235_p9 = scmp.lt.u32.totalorder %s2231_s27, %s3055_s6 }
  0x19   :  { %p2237_p10 = pnand %p2235_p9, %p2232_p8 }
  0x1b   :  { %2240 = shalt.err (!%p2237_p10)
}
  0x1c   :  { %s2241_s15 = scalar_lea.vmem %s68_s23, 512  ;;  %p2246_p12 = scmp.lt.s32.totalorder %s68_s23, %s68_s23 }
  0x1d   :  { %p2242_p11 = scmp.ne.s32.totalorder %s68_s23, %s2241_s15  ;;  %p2247_p13 = scmp.lt.s32.totalorder %s2241_s15, %s2241_s15 }
  0x1f   :  { %p2248_p0 = por %p2247_p13, %p2246_p12 }
  0x21   :  { %p2249_p1 = pnand %p2248_p0, %p2242_p11 }
  0x23   :  { %2252 = shalt.err (!%p2249_p1)
}
  0x24   :  { %s2399_s1 = smov 64   ;;  %s2400_s26 = smov 4  }
  0x25   :  { %73 = dma.hbm_to_vmem [thread:$0]  %s3055_s6, 512, %s68_s23, [#allocation9], %s2399_s1, %s2399_s1, %s2400_s26  }
  0x26   :  { %s2401_s20 = smov [#allocation2]   ;;  %s2402_s22 = smov [#allocation7]  }
  0x27   :  { %s30_s21 = sshll.u32 %s2401_s20, 4  ;;  %s56_s24 = sshll.u32 %s2402_s22, 4  ;;  %s31_s21 = int_to_ptr.vmem [resolvable:$true] %s30_s21  ;;  %s57_s24 = int_to_ptr.vmem [resolvable:$true] %s56_s24 }
  0x28   :  { %s2253_s28 = scalar_lea.hbm %s3049_s0, 64 }
  0x29   :  { %p2254_p2 = scmp.ne.s32.totalorder %s3049_s0, %s2253_s28  ;;  %p2257_p3 = scmp.lt.u32.totalorder %s2253_s28, %s3049_s0 }
  0x2b   :  { %p2259_p4 = pnand %p2257_p3, %p2254_p2 }
  0x2d   :  { %2262 = shalt.err (!%p2259_p4)
}
  0x2e   :  { %s2263_s6 = scalar_lea.vmem %s31_s21, 64  ;;  %p2268_p6 = scmp.lt.s32.totalorder %s31_s21, %s31_s21 }
  0x2f   :  { %p2264_p5 = scmp.ne.s32.totalorder %s31_s21, %s2263_s6  ;;  %p2269_p7 = scmp.lt.s32.totalorder %s2263_s6, %s2263_s6 }
  0x31   :  { %p2270_p8 = por %p2269_p7, %p2268_p6 }
  0x33   :  { %p2271_p9 = pnand %p2270_p8, %p2264_p5 }
  0x35   :  { %2274 = shalt.err (!%p2271_p9)
}
  0x36   :  { %33 = dma.hbm_to_vmem [thread:$0]  %s3049_s0, 64, %s31_s21, [#allocation3]  }
  0x37   :  { %s2275_s20 = scalar_lea.hbm %s3053_s4, 16 }
  0x38   :  { %p2276_p10 = scmp.ne.s32.totalorder %s3053_s4, %s2275_s20  ;;  %p2279_p11 = scmp.lt.u32.totalorder %s2275_s20, %s3053_s4 }
  0x3a   :  { %p2281_p12 = pnand %p2279_p11, %p2276_p10 }
  0x3c   :  { %2284 = shalt.err (!%p2281_p12)
}
  0x3d   :  { %s2285_s29 = scalar_lea.vmem %s57_s24, 16  ;;  %s2289_s30 = scalar_lea.vmem %s57_s24, 32 }
  0x3e   :  { %p2286_p13 = scmp.ne.s32.totalorder %s57_s24, %s2285_s29  ;;  %p2290_p0 = scmp.lt.s32.totalorder %s57_s24, %s57_s24 }
  0x3f   :  { %p2291_p1 = scmp.lt.s32.totalorder %s2289_s30, %s2285_s29 }
  0x41   :  { %p2292_p2 = por %p2291_p1, %p2290_p0 }
  0x43   :  { %p2293_p3 = pnand %p2292_p2, %p2286_p13 }
  0x45   :  { %2296 = shalt.err (!%p2293_p3)
}
  0x46   :  { %59 = dma.hbm_to_vmem [thread:$0]  %s3053_s4, 16, %s57_s24, [#allocation6]  }
  0x47   :  { %s2403_s14 = smov [#allocation10]   ;;  %s2297_s26 = scalar_lea.hbm %s3058_s9, 2048 }
  0x48   :  { %s83_s15 = sshll.u32 %s2403_s14, 4  ;;  %p2298_p4 = scmp.ne.s32.totalorder %s3058_s9, %s2297_s26  ;;  %s84_s15 = int_to_ptr.vmem [resolvable:$true] %s83_s15 }
  0x49   :  { %p2301_p5 = scmp.lt.u32.totalorder %s2297_s26, %s3058_s9 }
  0x4b   :  { %p2303_p6 = pnand %p2301_p5, %p2298_p4 }
  0x4d   :  { %2306 = shalt.err (!%p2303_p6)
}
  0x4e   :  { %s2307_s25 = scalar_lea.vmem %s84_s15, 2048  ;;  %p2312_p8 = scmp.lt.s32.totalorder %s84_s15, %s84_s15 }
  0x4f   :  { %p2308_p7 = scmp.ne.s32.totalorder %s84_s15, %s2307_s25  ;;  %p2313_p9 = scmp.lt.s32.totalorder %s2307_s25, %s2307_s25 }
  0x51   :  { %p2314_p10 = por %p2313_p9, %p2312_p8 }
  0x53   :  { %p2315_p11 = pnand %p2314_p10, %p2308_p7 }
  0x55   :  { %2318 = shalt.err (!%p2315_p11)
}
  0x56   :  { %s2404_s4 = smov 512   ;;  %s2405_s24 = smov 32  }
  0x57   :  { %89 = dma.hbm_to_vmem [thread:$0]  %s3058_s9, 2048, %s84_s15, [#allocation9], %s2404_s4, %s2404_s4, %s2405_s24  }
  0x58   :  { %2385 = dma.done.wait [#allocation3], 64  }
  0x59   :  { %2386 = vsyncadd [#allocation3], 4294967232 }
  0x5a   :  { %2387 = dma.done.wait [#allocation6], 272  }
  0x5b   :  { %2388 = vsyncadd [#allocation6], 4294967024 }
  0x5c   :  { %2389 = dma.done.wait [#allocation9], 2560  }
  0x5d   :  { %2390 = vsyncadd [#allocation9], 4294964736  ;;  %v132_v0 = vlaneseq  ;;  %v2406_v1 = vmov 1966171168   ;;  %v2559_v8 = vld [vmem:[%s3051_s2] sm:$0xf] }
  0x5e   :  { %v130_v2 = vunpack.c.l.s4 %v2406_v1  ;;  %v2561_v9 = vld [vmem:[#allocation5 + $0x8] sm:$0xff]  ;;  %v2572_v13 = vld [vmem:[%s3051_s2 + $0x8] sm:$0xf]  ;;  %v2577_v14 = vld [vmem:[%s3051_s2 + $0x4] sm:$0xf]  ;;  %vm225_vm0 = vcmask 261120   ;;  %v119_v17 = vunpack.c.l.bf16 %v2559_v8 }
  0x5f   :  { %v2550_v3 = vshrl.u32 %v132_v0, 7  ;;  %v259_v4 = vand.u32 127, %v132_v0  ;;  %v128_v10 = vcombine.high %v2561_v9, %v2561_v9  ;;  %v2582_v15 = vld [vmem:[%s3051_s2 + $0xc] sm:$0xf]  ;;  %v2587_v16 = vld [vmem:[%s3051_s2 + $0x10] sm:$0xf]  ;;  %v121_v22 = vunpack.c.l.bf16 %v2572_v13 }
  0x60   :  { %v131_v5 = vunpack.c.0.s8 %v130_v2  ;;  %v2593_v21 = vld [vmem:[%s3051_s2 + $0x14] sm:$0xf]  ;;  %v120_v23 = vunpack.c.l.bf16 %v2577_v14  ;;  %v2601_v28 = vld [vmem:[%s3051_s2 + $0x18] sm:$0xf]  ;;  %v122_v29 = vunpack.c.l.bf16 %v2582_v15  ;;  %v123_v30 = vunpack.c.l.bf16 %v2587_v16  ;;  %v2612_v40 = vld [vmem:[%s3051_s2 + $0x1c] sm:$0xf] }
  0x61   :  { %v2553_v6 = vsub.s32 %v259_v4, %v2550_v3  ;;  %v2567_v12 = vsub.s32 0, %v2550_v3  ;;  %v124_v37 = vunpack.c.l.bf16 %v2593_v21  ;;  %v125_v47 = vunpack.c.l.bf16 %v2601_v28  ;;  %s2410_s2 = smov 96  }
  0x62   :  { %v134_v7 = vsub.s32 %v131_v5, %v2550_v3  ;;  %v126_v55 = vunpack.c.l.bf16 %v2612_v40  ;;  %vm292_vm1 = vcmask 1041409   ;;  %vm294_vm2 = vcmask 1042434  }
  0x63   :  { %vm296_vm3 = vcmask 1043459   ;;  %vm298_vm4 = vcmask 1044484   ;;  %vm300_vm5 = vcmask 1045509   ;;  %vm302_vm6 = vcmask 1046534  }
  0x64   :  { %v135_v11 = vrot.slane %v2561_v9, %v134_v7  ;;  %v142_v20 = vrot.slane %v128_v10, %v134_v7  ;;  %vm304_vm7 = vcmask 1047559   ;;  %vm307_vm8 = vcmask 64512  }
  0x65   :  { %vm602_vm9 = vcmask 1043456   ;;  %vm2409_vm10 = vmmov 0   ;;  %vm1121_vm11 = vcmask 523264  }
  0x66   :  { %v151_v18 = vrot.slane %v135_v11, %v134_v7  ;;  %v143_v19 = vcombine.high %v135_v11, %v135_v11  ;;  %v158_v27 = vrot.slane %v142_v20, %v134_v7  ;;  %v144_v31 = vcombine.high %v142_v20, %v142_v20 }
  0x68   :  { %v180_v24 = vrot.slane %v151_v18, %v2567_v12  ;;  %v173_v25 = vcombine.high %v151_v18, %v151_v18  ;;  %v165_v26 = vrot.slane %v143_v19, %v134_v7  ;;  %v196_v36 = vrot.slane %v158_v27, %v2567_v12 }
  0x69   :  { %v172_v38 = vrot.slane %v144_v31, %v134_v7  ;;  %v174_v39 = vcombine.high %v158_v27, %v158_v27 }
  0x6a   :  { %v217_v32 = vmul.f32 %v180_v24, %v119_v17  ;;  %v188_v33 = vrot.slane %v173_v25, %v2567_v12  ;;  %v184_v34 = vrot.slane %v165_v26, %v2567_v12  ;;  %v175_v35 = vcombine.high %v165_v26, %v165_v26 }
  0x6b   :  { %v221_v45 = vmul.f32 %v196_v36, %v123_v30  ;;  %v200_v46 = vrot.slane %v172_v38, %v2567_v12  ;;  %v176_v48 = vcombine.high %v172_v38, %v172_v38  ;;  %v204_v52 = vrot.slane %v174_v39, %v2567_v12 }
  0x6c   :  { %v226_v41 = vsel %vm225_vm0, %v217_v32, 0.0  ;;  %v219_v42 = vmul.f32 %v188_v33, %v121_v22  ;;  %v218_v43 = vmul.f32 %v184_v34, %v120_v23  ;;  %v192_v44 = vrot.slane %v175_v35, %v2567_v12 }
  0x6d   :  { %227 = vadd.xlane.f32.xlu0 %v226_v41  ;;  %v222_v54 = vmul.f32 %v200_v46, %v124_v37  ;;  %v208_v56 = vrot.slane %v176_v48, %v2567_v12  ;;  %v238_v57 = vsel %vm225_vm0, %v221_v45, 0.0  ;;  %v223_v58 = vmul.f32 %v204_v52, %v125_v47 }
  0x6e   :  { %v232_v49 = vsel %vm225_vm0, %v219_v42, 0.0  ;;  %v229_v50 = vsel %vm225_vm0, %v218_v43, 0.0  ;;  %v220_v51 = vmul.f32 %v192_v44, %v122_v29  ;;  %v2407_v34 = vmov 0  }
  0x6f   :  { %233 = vadd.xlane.f32.xlu1 %v232_v49  ;;  %v241_v59 = vsel %vm225_vm0, %v222_v54, 0.0  ;;  %v224_v60 = vmul.f32 %v208_v56, %v126_v55  ;;  %v244_v61 = vsel %vm225_vm0, %v223_v58, 0.0  ;;  %2132 = vset.pattern.permute.xlu0 %v2407_v34  ;;  %v2647_v35 = vsub.s32 1, %v2550_v3 }
  0x70   :  { %v235_v53 = vsel %vm225_vm0, %v220_v51, 0.0  ;;  %2131 = vset.pattern.permute.xlu1 %v2407_v34  ;;  %v2650_v36 = vsub.s32 2, %v2550_v3  ;;  %v2653_v37 = vsub.s32 3, %v2550_v3  ;;  %v2659_v43 = vsub.s32 4, %v2550_v3 }
  0x71   :  { %230 = vadd.xlane.f32.xlu0 %v229_v50  ;;  %v247_v62 = vsel %vm225_vm0, %v224_v60, 0.0  ;;  %v2663_v50 = vsub.s32 5, %v2550_v3  ;;  %v2667_v54 = vsub.s32 6, %v2550_v3  ;;  %v2671_v58 = vsub.s32 7, %v2550_v3 }
  0x73   :  { %236 = vadd.xlane.f32.xlu1 %v235_v53 }
  0x75   :  { %239 = vadd.xlane.f32.xlu0 %v238_v57 }
  0x77   :  { %242 = vadd.xlane.f32.xlu1 %v241_v59 }
  0x79   :  { %245 = vadd.xlane.f32.xlu0 %v244_v61 }
  0x7b   :  { %248 = vadd.xlane.f32.xlu1 %v247_v62 }
  0xfa   :  { %v228_v63 = vpop.xlane.xlu0 %227 }
  0xfb   :  { %v263_v2 = vrot.slane %v228_v63, %v2553_v6 }
  0xfc   :  { %v234_v0 = vpop.xlane.xlu1 %233 }
  0xfd   :  { %v271_v5 = vrot.slane %v234_v0, %v2553_v6 }
  0xfe   :  { %v231_v1 = vpop.xlane.xlu0 %230 }
  0xff   :  { %v267_v4 = vrot.slane %v231_v1, %v2553_v6 }
 0x100   :  { %v237_v7 = vpop.xlane.xlu1 %236 }
 0x101   :  { %v293_v10 = vsel %vm292_vm1, %v267_v4, %v263_v2  ;;  %v275_v11 = vrot.slane %v237_v7, %v2553_v6 }
 0x102   :  { %v295_v17 = vsel %vm294_vm2, %v271_v5, %v293_v10  ;;  %v240_v18 = vpop.xlane.xlu0 %239 }
 0x103   :  { %v297_v19 = vsel %vm296_vm3, %v275_v11, %v295_v17  ;;  %v279_v20 = vrot.slane %v240_v18, %v2553_v6 }
 0x104   :  { %v243_v22 = vpop.xlane.xlu1 %242 }
 0x105   :  { %v299_v23 = vsel %vm298_vm4, %v279_v20, %v297_v19  ;;  %v283_v24 = vrot.slane %v243_v22, %v2553_v6 }
 0x106   :  { %v246_v25 = vpop.xlane.xlu0 %245 }
 0x107   :  { %v287_v26 = vrot.slane %v246_v25, %v2553_v6  ;;  %v301_v27 = vsel %vm300_vm5, %v283_v24, %v299_v23 }
 0x108   :  { %v249_v29 = vpop.xlane.xlu1 %248 }
 0x109   :  { %v291_v30 = vrot.slane %v249_v29, %v2553_v6  ;;  %v303_v31 = vsel %vm302_vm6, %v287_v26, %v301_v27 }
 0x10b   :  { %v305_v32 = vsel %vm304_vm7, %v291_v30, %v303_v31 }
 0x10c   :  { %v308_v33 = vsel %vm307_vm8, %v305_v32, -inf }
 0x10d   :  { %309 = vmax.xlane.f32.xlu0 %v308_v33 }
 0x19a   :  { %v310_v38 = vpop.xlane.xlu0 %309 }
 0x19b   :  { %v315_v39 = vrot.slane %v310_v38, %v2567_v12  ;;  %v319_v41 = vrot.slane %v310_v38, %v2647_v35  ;;  %v323_v42 = vrot.slane %v310_v38, %v2650_v36  ;;  %v327_v44 = vrot.slane %v310_v38, %v2653_v37 }
 0x19c   :  { %v331_v51 = vrot.slane %v310_v38, %v2659_v43  ;;  %v335_v55 = vrot.slane %v310_v38, %v2663_v50  ;;  %v339_v59 = vrot.slane %v310_v38, %v2667_v54 }
 0x19d   :  { %v352_v45 = vsub.f32 %v228_v63, %v315_v39  ;;  %v353_v46 = vsub.f32 %v231_v1, %v319_v41  ;;  %v354_v47 = vsub.f32 %v234_v0, %v323_v42  ;;  %v355_v52 = vsub.f32 %v237_v7, %v327_v44 }
 0x19e   :  { %v356_v56 = vsub.f32 %v240_v18, %v331_v51  ;;  %v357_v60 = vsub.f32 %v243_v22, %v335_v55  ;;  %v343_v0 = vrot.slane %v310_v38, %v2671_v58  ;;  %v358_v1 = vsub.f32 %v246_v25, %v339_v59 }
 0x19f   :  { %v360_v48 = vmul.f32 1.442695, %v352_v45  ;;  %v362_v49 = vmul.f32 1.442695, %v353_v46  ;;  %v364_v53 = vmul.f32 1.442695, %v354_v47 }
 0x1a0   :  { %v366_v57 = vmul.f32 1.442695, %v355_v52  ;;  %v368_v61 = vmul.f32 1.442695, %v356_v56  ;;  %v370_v2 = vmul.f32 1.442695, %v357_v60  ;;  %v359_v4 = vsub.f32 %v249_v29, %v343_v0 }
 0x1a1   :  { %2146 = vpow2.f32 %v360_v48  ;;  %v372_v5 = vmul.f32 1.442695, %v358_v1 }
 0x1a2   :  { %2148 = vpow2.f32 %v362_v49  ;;  %v374_v10 = vmul.f32 1.442695, %v359_v4 }
 0x1a3   :  { %2150 = vpow2.f32 %v364_v53 }
 0x1a4   :  { %2152 = vpow2.f32 %v366_v57 }
 0x1a5   :  { %2154 = vpow2.f32 %v368_v61 }
 0x1a6   :  { %2156 = vpow2.f32 %v370_v2 }
 0x1a7   :  { %2158 = vpow2.f32 %v372_v5 }
 0x1a8   :  { %2160 = vpow2.f32 %v374_v10 }
 0x1ab   :  { %v2674_v62 = vpop.eup %2146 }
 0x1ac   :  { %v2676_v63 = vpop.eup %2148  ;;  %385 = vperm.xlu1 %2131, %v2674_v62  }
 0x1ad   :  { %388 = vperm.xlu0 %2132, %v2676_v63   ;;  %v2681_v3 = vpop.eup %2150 }
 0x1ae   :  { %v2684_v7 = vpop.eup %2152 }
 0x1af   :  { %v2687_v11 = vpop.eup %2154 }
 0x1b0   :  { %391 = vperm.xlu1 %2131, %v2681_v3   ;;  %v2690_v17 = vpop.eup %2156 }
 0x1b1   :  { %v2693_v18 = vpop.eup %2158 }
 0x1b2   :  { %v2696_v19 = vpop.eup %2160 }
 0x1b4   :  { %394 = vperm.xlu1 %2131, %v2684_v7  }
 0x1b8   :  { %397 = vperm.xlu1 %2131, %v2687_v11  }
 0x1bc   :  { %400 = vperm.xlu1 %2131, %v2690_v17  }
 0x1c0   :  { %403 = vperm.xlu1 %2131, %v2693_v18  }
 0x1c4   :  { %406 = vperm.xlu1 %2131, %v2696_v19  }
 0x22b   :  { %v386_v20 = vpop.permute.xlu1 %385 }
 0x22c   :  { %v389_v25 = vpop.permute.xlu0 %388  ;;  %v411_v29 = vrot.slane %v386_v20, %v2553_v6 }
 0x22d   :  { %v415_v27 = vrot.slane %v389_v25, %v2553_v6 }
 0x22f   :  { %v392_v22 = vpop.permute.xlu1 %391  ;;  %v440_v38 = vsel %vm292_vm1, %v415_v27, %v411_v29 }
 0x230   :  { %v419_v30 = vrot.slane %v392_v22, %v2553_v6 }
 0x232   :  { %v441_v41 = vsel %vm294_vm2, %v419_v30, %v440_v38  ;;  %v2408_v30 = vmov 0.0  }
 0x233   :  { %v395_v23 = vpop.permute.xlu1 %394  ;;  %2020 = vmatprep.subr.bf16.mxu0 %v2408_v30  ;;  %2026 = vmatprep.subr.bf16.mxu1 %v2408_v30 }
 0x234   :  { %v423_v31 = vrot.slane %v395_v23, %v2553_v6  ;;  %2022 = vmatprep.mubr.msk.bf16.mxu0 %vm2409_vm10, %v2408_v30  ;;  %2028 = vmatprep.mubr.msk.bf16.mxu1 %vm2409_vm10, %v2408_v30 }
 0x236   :  { %v442_v44 = vsel %vm296_vm3, %v423_v31, %v441_v41 }
 0x237   :  { %v398_v24 = vpop.permute.xlu1 %397 }
 0x238   :  { %v427_v32 = vrot.slane %v398_v24, %v2553_v6 }
 0x23a   :  { %v443_v45 = vsel %vm298_vm4, %v427_v32, %v442_v44 }
 0x23b   :  { %v401_v26 = vpop.permute.xlu1 %400 }
 0x23c   :  { %v431_v39 = vrot.slane %v401_v26, %v2553_v6 }
 0x23e   :  { %v444_v47 = vsel %vm300_vm5, %v431_v39, %v443_v45 }
 0x23f   :  { %v404_v33 = vpop.permute.xlu1 %403 }
 0x240   :  { %v435_v42 = vrot.slane %v404_v33, %v2553_v6 }
 0x242   :  { %v445_v49 = vsel %vm302_vm6, %v435_v42, %v444_v47 }
 0x243   :  { %v407_v46 = vpop.permute.xlu1 %406 }
 0x244   :  { %v439_v48 = vrot.slane %v407_v46, %v2553_v6 }
 0x246   :  { %v446_v51 = vsel %vm304_vm7, %v439_v48, %v445_v49 }
 0x247   :  { %v448_v52 = vsel %vm307_vm8, %v446_v51, 0.0 }
 0x248   :  { %449 = vadd.xlane.f32.xlu1 %v448_v52 }
 0x2d5   :  { %v450_v53 = vpop.xlane.xlu1 %449 }
 0x2d6   :  { %v455_v55 = vrot.slane %v450_v53, %v2567_v12  ;;  %v459_v56 = vrot.slane %v450_v53, %v2647_v35  ;;  %v463_v57 = vrot.slane %v450_v53, %v2650_v36  ;;  %v467_v59 = vrot.slane %v450_v53, %v2653_v37 }
 0x2d7   :  { %v471_v60 = vrot.slane %v450_v53, %v2659_v43  ;;  %v475_v0 = vrot.slane %v450_v53, %v2663_v50  ;;  %v479_v20 = vrot.slane %v450_v53, %v2667_v54 }
 0x2d8   :  { %2162 = vrcp.f32 %v455_v55  ;;  %v716_v55 = vsel %vm602_vm9, %v2572_v13, 0 }
 0x2d9   :  { %2164 = vrcp.f32 %v459_v56 }
 0x2da   :  { %2166 = vrcp.f32 %v463_v57 }
 0x2db   :  { %2168 = vrcp.f32 %v467_v59  ;;  %v772_v59 = vsel %vm602_vm9, %v2582_v15, 0 }
 0x2dc   :  { %2170 = vrcp.f32 %v471_v60 }
 0x2dd   :  { %2172 = vrcp.f32 %v475_v0  ;;  %v828_v0 = vsel %vm602_vm9, %v2587_v16, 0 }
 0x2de   :  { %2174 = vrcp.f32 %v479_v20 }
 0x2e2   :  { %v2163_v61 = vpop.eup %2162 }
 0x2e3   :  { %v2165_v1 = vpop.eup %2164  ;;  %v2722_v2 = vmul.f32 %v2163_v61, %v2674_v62 }
 0x2e4   :  { %v2167_v4 = vpop.eup %2166  ;;  %v2725_v5 = vmul.f32 %v2165_v1, %v2676_v63  ;;  %v483_v63 = vrot.slane %v450_v53, %v2671_v58 }
 0x2e5   :  { %v581_v10 = vpack.c.bf16 %v2722_v2, %v2722_v2  ;;  %v2169_v22 = vpop.eup %2168  ;;  %v2733_v25 = vmul.f32 %v2167_v4, %v2681_v3  ;;  %v604_v3 = vsel %vm602_vm9, %v2559_v8, 0  ;;  %v660_v8 = vsel %vm602_vm9, %v2577_v14, 0 }
 0x2e6   :  { %v582_v24 = vpack.c.bf16 %v2725_v5, %v2725_v5  ;;  %v2736_v62 = vmul.f32 %v2169_v22, %v2684_v7  ;;  %v2171_v29 = vpop.eup %2170  ;;  %2021 = vmatpush3.bf16.msra.mxu0 %v604_v3  ;;  %2176 = vrcp.f32 %v483_v63  ;;  %2027 = vmatpush3.bf16.msra.mxu1 %v660_v8  ;;  %v2135_v8 = vld [vmem:[%s3052_s3 + $0x8] sm:$0xff]  }
 0x2e7   :  { %v590_v23 = vunpack.c.l.b16 %v581_v10  ;;  %v583_v27 = vpack.c.bf16 %v2733_v25, %v2733_v25  ;;  %2032 = vmatprep.subr.bf16.mxu0 %v2408_v30  ;;  %v2751_v32 = vmul.f32 %v2171_v29, %v2687_v11  ;;  %v2173_v33 = vpop.eup %2172  ;;  %2038 = vmatprep.subr.bf16.mxu1 %v2408_v30  ;;  %v884_v10 = vsel %vm602_vm9, %v2593_v21, 0 }
 0x2e8   :  { %v647_v26 = vunpack.c.l.b16 %v582_v24  ;;  %v584_v31 = vpack.c.bf16 %v2736_v62, %v2736_v62  ;;  %v2761_v41 = vmul.f32 %v2173_v33, %v2690_v17  ;;  %v2175_v11 = vpop.eup %2174  ;;  %v2136_v33 = vld [vmem:[%s3052_s3 + $0x10] sm:$0xff]  }
 0x2e9   :  { %592 = vperm.xlu0 %2132, %v590_v23   ;;  %v703_v7 = vunpack.c.l.b16 %v583_v27  ;;  %v585_v39 = vpack.c.bf16 %v2751_v32, %v2751_v32  ;;  %v2766_v44 = vmul.f32 %v2175_v11, %v2693_v18  ;;  %v940_v23 = vsel %vm602_vm9, %v2601_v28, 0 }
 0x2ea   :  { %v759_v38 = vunpack.c.l.b16 %v584_v31  ;;  %v586_v14 = vpack.c.bf16 %v2761_v41, %v2761_v41  ;;  %v2134_v31 = vld [vmem:[%s3052_s3] sm:$0xff]  }
 0x2eb   :  { %v815_v42 = vunpack.c.l.b16 %v585_v39  ;;  %v587_v47 = vpack.c.bf16 %v2766_v44, %v2766_v44 }
 0x2ec   :  { %v871_v46 = vunpack.c.l.b16 %v586_v14 }
 0x2ed   :  { %649 = vperm.xlu0 %2132, %v647_v26   ;;  %v927_v17 = vunpack.c.l.b16 %v587_v47  ;;  %v996_v26 = vsel %vm602_vm9, %v2612_v40, 0 }
 0x2f0   :  { %v2177_v45 = vpop.eup %2176 }
 0x2f1   :  { %705 = vperm.xlu0 %2132, %v703_v7   ;;  %v2771_v48 = vmul.f32 %v2177_v45, %v2696_v19 }
 0x2f3   :  { %v588_v49 = vpack.c.bf16 %v2771_v48, %v2771_v48 }
 0x2f5   :  { %761 = vperm.xlu0 %2132, %v759_v38   ;;  %v983_v51 = vunpack.c.l.b16 %v588_v49  ;;  %v2137_v38 = vld [vmem:[%s3052_s3 + $0x18] sm:$0xff]  }
 0x2f9   :  { %817 = vperm.xlu0 %2132, %v815_v42  }
 0x2fd   :  { %873 = vperm.xlu0 %2132, %v871_v46  }
 0x301   :  { %929 = vperm.xlu0 %2132, %v927_v17  }
 0x305   :  { %985 = vperm.xlu0 %2132, %v983_v51  }
 0x368   :  { %v593_v52 = vpop.permute.xlu0 %592 }
 0x369   :  { %v597_v18 = vrot.slane %v593_v52, %v2553_v6 }
 0x36b   :  { %v598_v53 = vpack.c.b16 %v597_v18, %v597_v18 }
 0x36c   :  { %v650_v56 = vpop.permute.xlu0 %649 }
 0x36d   :  { %v654_v57 = vrot.slane %v650_v56, %v2553_v6  ;;  %2023 = vmatmul.mubr.msk.bf16.vlgmr.msra.gmra.mrb[0].mxu0 %vm307_vm8, %v598_v53 }
 0x36e   :  { %2033 = vmatpush3.bf16.msra.mxu0 %v716_v55  ;;  %2034 = vmatprep.mubr.msk.bf16.mxu0 %vm2409_vm10, %v2408_v30 }
 0x36f   :  { %v655_v19 = vpack.c.b16 %v654_v57, %v654_v57  ;;  %2044 = vmatprep.subr.bf16.mxu0 %v2408_v30 }
 0x370   :  { %v706_v60 = vpop.permute.xlu0 %705 }
 0x371   :  { %v710_v61 = vrot.slane %v706_v60, %v2553_v6  ;;  %2029 = vmatmul.mubr.msk.bf16.vlgmr.msra.gmra.mrb[0].mxu1 %vm307_vm8, %v655_v19 }
 0x372   :  { %2039 = vmatpush3.bf16.msra.mxu1 %v772_v59  ;;  %2040 = vmatprep.mubr.msk.bf16.mxu1 %vm2409_vm10, %v2408_v30 }
 0x373   :  { %v711_v13 = vpack.c.b16 %v710_v61, %v710_v61  ;;  %2050 = vmatprep.subr.bf16.mxu1 %v2408_v30 }
 0x374   :  { %v762_v1 = vpop.permute.xlu0 %761 }
 0x375   :  { %v766_v15 = vrot.slane %v762_v1, %v2553_v6  ;;  %2035 = vmatmul.mubr.msk.bf16.vlgmr.msra.gmra.mrb[4].mxu0 %vm307_vm8, %v711_v13 }
 0x376   :  { %2045 = vmatpush3.bf16.msra.mxu0 %v828_v0  ;;  %2046 = vmatprep.mubr.msk.bf16.mxu0 %vm2409_vm10, %v2408_v30 }
 0x377   :  { %v767_v4 = vpack.c.b16 %v766_v15, %v766_v15  ;;  %2056 = vmatprep.subr.bf16.mxu0 %v2408_v30 }
 0x378   :  { %v818_v20 = vpop.permute.xlu0 %817 }
 0x379   :  { %v822_v16 = vrot.slane %v818_v20, %v2553_v6  ;;  %2041 = vmatmul.mubr.msk.bf16.vlgmr.msra.gmra.mrb[4].mxu1 %vm307_vm8, %v767_v4 }
 0x37a   :  { %2051 = vmatpush3.bf16.msra.mxu1 %v884_v10  ;;  %2052 = vmatprep.mubr.msk.bf16.mxu1 %vm2409_vm10, %v2408_v30 }
 0x37b   :  { %v823_v22 = vpack.c.b16 %v822_v16, %v822_v16  ;;  %2062 = vmatprep.subr.bf16.mxu1 %v2408_v30 }
 0x37c   :  { %v874_v24 = vpop.permute.xlu0 %873 }
 0x37d   :  { %v878_v21 = vrot.slane %v874_v24, %v2553_v6  ;;  %2047 = vmatmul.mubr.msk.bf16.vlgmr.msra.gmra.mrb[8].mxu0 %vm307_vm8, %v823_v22 }
 0x37e   :  { %2057 = vmatpush3.bf16.msra.mxu0 %v940_v23  ;;  %2058 = vmatprep.mubr.msk.bf16.mxu0 %vm2409_vm10, %v2408_v30 }
 0x37f   :  { %v879_v63 = vpack.c.b16 %v878_v21, %v878_v21  ;;  %2068 = vmatprep.subr.bf16.mxu0 %v2408_v30 }
 0x380   :  { %v930_v27 = vpop.permute.xlu0 %929 }
 0x381   :  { %v934_v28 = vrot.slane %v930_v27, %v2553_v6  ;;  %2053 = vmatmul.mubr.msk.bf16.vlgmr.msra.gmra.mrb[8].mxu1 %vm307_vm8, %v879_v63 }
 0x382   :  { %2063 = vmatpush3.bf16.msra.mxu1 %v996_v26  ;;  %2064 = vmatprep.mubr.msk.bf16.mxu1 %vm2409_vm10, %v2408_v30 }
 0x383   :  { %v935_v29 = vpack.c.b16 %v934_v28, %v934_v28  ;;  %2080 = vmatprep.subr.bf16.mxu1 %v2408_v30 }
 0x384   :  { %v986_v3 = vpop.permute.xlu0 %985 }
 0x385   :  { %v990_v7 = vrot.slane %v986_v3, %v2553_v6  ;;  %2059 = vmatmul.mubr.msk.bf16.vlgmr.msra.gmra.mrb[12].mxu0 %vm307_vm8, %v935_v29 }
 0x386   :  { %2076 = vmatprep.mubr.msk.bf16.mxu0 %vm2409_vm10, %v2408_v30  ;;  %2069 = vmatpush3.bf16.msra.mxu0 %v2134_v31 }
 0x387   :  { %v991_v40 = vpack.c.b16 %v990_v7, %v990_v7  ;;  %2070 = vmatprep.subr.bf16.mxu0 %v2408_v30 }
 0x389   :  { %2065 = vmatmul.mubr.msk.bf16.vlgmr.msra.gmra.mrb[12].mxu1 %vm307_vm8, %v991_v40 }
 0x38a   :  { %2084 = vmatprep.mubr.msk.bf16.mxu1 %vm2409_vm10, %v2408_v30  ;;  %2071 = vmatpush3.bf16.msra.mxu0 %v2135_v8 }
 0x38b   :  { %2072 = vmatprep.subr.bf16.mxu0 %v2408_v30 }
 0x38e   :  { %2073 = vmatpush3.bf16.msra.mxu0 %v2136_v33 }
 0x38f   :  { %2074 = vmatprep.subr.bf16.mxu0 %v2408_v30 }
 0x392   :  { %2075 = vmatpush3.bf16.msra.mxu0 %v2137_v38 }
 0x393   :  { %2096 = vmatprep.subr.bf16.mxu0 %v2408_v30 }
 0x440   :  { %v640_v39 = vpop.f32.mrb[0].mxu0 }
 0x441   :  { %v2024_v11 = vpop.f32.mrb[1].mxu0  ;;  %v1038_v46 = vpack.c.bf16 %v640_v39, %v640_v39 }
 0x442   :  { %v643_v42 = vpop.f32.mrb[2].mxu0 }
 0x443   :  { %v2025_v14 = vpop.f32.mrb[3].mxu0  ;;  %v1054_v53 = vunpack.c.l.b16 %v1038_v46  ;;  %v2138_v46 = vld [vmem:[%s3054_s5] sm:$0xff]  }
 0x444   :  { %v696_v45 = vpop.f32.mrb[0].mxu1  ;;  %2081 = vmatpush3.bf16.msra.mxu1 %v2138_v46 }
 0x445   :  { %v1039_v47 = vpack.c.bf16 %v696_v45, %v696_v45  ;;  %v2030_v17 = vpop.f32.mrb[1].mxu1  ;;  %2082 = vmatprep.subr.bf16.mxu1 %v2408_v30 }
 0x446   :  { %v699_v49 = vpop.f32.mrb[2].mxu1 }
 0x447   :  { %v1055_v51 = vunpack.c.l.b16 %v1039_v47  ;;  %v2031_v52 = vpop.f32.mrb[3].mxu1 }
 0x448   :  { %v752_v18 = vpop.f32.mrb[4].mxu0 }
 0x449   :  { %v1062_v55 = vrot.slane %v1055_v51, 7  ;;  %v1040_v56 = vpack.c.bf16 %v752_v18, %v752_v18  ;;  %v2036_v57 = vpop.f32.mrb[5].mxu0 }
 0x44a   :  { %v755_v19 = vpop.f32.mrb[6].mxu0 }
 0x44b   :  { %v1063_v59 = vsel %vm292_vm1, %v1062_v55, %v1054_v53  ;;  %v1056_v60 = vunpack.c.l.b16 %v1040_v56  ;;  %v2037_v61 = vpop.f32.mrb[7].mxu0 }
 0x44c   :  { %v808_v13 = vpop.f32.mrb[4].mxu1 }
 0x44d   :  { %v1064_v0 = vrot.slane %v1056_v60, 6  ;;  %v1041_v1 = vpack.c.bf16 %v808_v13, %v808_v13  ;;  %v2042_v15 = vpop.f32.mrb[5].mxu1  ;;  %v108_v13 = vld [vmem:[#allocation2] sm:$0xf] }
 0x44e   :  { %v811_v4 = vpop.f32.mrb[6].mxu1  ;;  %v2139_v15 = vld [vmem:[%s3054_s5 + $0x8] sm:$0xff]  }
 0x44f   :  { %v1065_v10 = vsel %vm294_vm2, %v1064_v0, %v1063_v59  ;;  %v1057_v20 = vunpack.c.l.b16 %v1041_v1  ;;  %v2043_v16 = vpop.f32.mrb[7].mxu1  ;;  %2083 = vmatpush3.bf16.msra.mxu1 %v2139_v15  ;;  %v1937_v4 = vld [vmem:[#allocation7] ss:$0 sm:$0xff] }
 0x450   :  { %v864_v22 = vpop.f32.mrb[8].mxu0  ;;  %2088 = vmatprep.subr.bf16.mxu1 %v2408_v30 }
 0x451   :  { %v1066_v23 = vrot.slane %v1057_v20, 5  ;;  %v1042_v24 = vpack.c.bf16 %v864_v22, %v864_v22  ;;  %v2048_v21 = vpop.f32.mrb[9].mxu0 }
 0x452   :  { %v867_v63 = vpop.f32.mrb[10].mxu0  ;;  %v2140_v21 = vld [vmem:[#allocation8] sm:$0xff]  }
 0x453   :  { %v1067_v26 = vsel %vm296_vm3, %v1066_v23, %v1065_v10  ;;  %v1058_v27 = vunpack.c.l.b16 %v1042_v24  ;;  %v2049_v28 = vpop.f32.mrb[11].mxu0 }
 0x454   :  { %v920_v29 = vpop.f32.mrb[8].mxu1 }
 0x455   :  { %v1068_v3 = vrot.slane %v1058_v27, 4  ;;  %v1043_v7 = vpack.c.bf16 %v920_v29, %v920_v29  ;;  %v2054_v40 = vpop.f32.mrb[9].mxu1  ;;  %v1165_v27 = vld [vmem:[#allocation5] sm:$0xff] }
 0x456   :  { %v923_v31 = vpop.f32.mrb[10].mxu1  ;;  %v1167_v28 = vpack.c.bf16 %v1165_v27, %v1165_v27 }
 0x457   :  { %v1069_v8 = vsel %vm298_vm4, %v1068_v3, %v1067_v26  ;;  %v1059_v33 = vunpack.c.l.b16 %v1043_v7  ;;  %v2055_v38 = vpop.f32.mrb[11].mxu1  ;;  %v2141_v26 = vld [vmem:[#allocation8 + $0x8] sm:$0xff]  }
 0x458   :  { %v976_v39 = vpop.f32.mrb[12].mxu0  ;;  %v1947_v31 = vld [vmem:[%s3057_s8] ss:$0 sm:$0xff] }
 0x459   :  { %v1070_v11 = vrot.slane %v1059_v33, 3  ;;  %v1044_v42 = vpack.c.bf16 %v976_v39, %v976_v39  ;;  %v2060_v14 = vpop.f32.mrb[13].mxu0 }
 0x45a   :  { %v979_v45 = vpop.f32.mrb[14].mxu0 }
 0x45b   :  { %v1071_v47 = vsel %vm300_vm5, %v1070_v11, %v1069_v8  ;;  %v1060_v17 = vunpack.c.l.b16 %v1044_v42  ;;  %v2061_v49 = vpop.f32.mrb[15].mxu0  ;;  %v1943_v42 = vld [vmem:[%s3056_s7] ss:$0 sm:$0xff] }
 0x45c   :  { %v1032_v51 = vpop.f32.mrb[12].mxu1 }
 0x45d   :  { %v1072_v52 = vrot.slane %v1060_v17, 2  ;;  %v1045_v18 = vpack.c.bf16 %v1032_v51, %v1032_v51  ;;  %v2066_v53 = vpop.f32.mrb[13].mxu1 }
 0x45e   :  { %v1035_v55 = vpop.f32.mrb[14].mxu1 }
 0x45f   :  { %v1061_v56 = vunpack.c.l.b16 %v1045_v18  ;;  %v2067_v57 = vpop.f32.mrb[15].mxu1  ;;  %v1073_v19 = vsel %vm302_vm6, %v1072_v52, %v1071_v47  ;;  %v2142_v55 = vld [vmem:[#allocation8 + $0x10] sm:$0xff]  }
 0x461   :  { %v1074_v59 = vrot.slane %v1061_v56, 1  ;;  %v2144_v56 = vld [vmem:[%s3054_s5 + $0x10] sm:$0xff]  }
 0x463   :  { %v1075_v60 = vsel %vm304_vm7, %v1074_v59, %v1073_v19  ;;  %v2143_v19 = vld [vmem:[#allocation8 + $0x18] sm:$0xff]   ;;  %v2145_v59 = vld [vmem:[%s3054_s5 + $0x18] sm:$0xff]  }
 0x464   :  { %v1076_v61 = vpack.c.b16 %v1075_v60, %v1075_v60  ;;  %v1337_v60 = vpack.c.bf16 %v2561_v9, %v2561_v9  ;;  %v1962_v9 = vld [vmem:[%s3057_s8 + $0x1] ss:$0 sm:$0xff] }
 0x466   :  { %1077 = vrot.lane.b32.xlu1 %v1076_v61, %s2405_s24 }
 0x4d8   :  { %v1078_v0 = vpop.permute.xlu1 %1077 }
 0x4d9   :  { %v1081_v1 = vsel %vm225_vm0, %v108_v13, %v1078_v0 }
 0x4da   :  { %2077 = vmatmul.mubr.msk.bf16.vlgmr.msra.gmra.mrb[16].mxu0 %vm1121_vm11, %v1081_v1 }
 0x4db   :  { %2100 = vmatprep.mubr.msk.bf16.mxu0 %vm2409_vm10, %v2408_v30  ;;  %2097 = vmatpush3.bf16.msra.mxu0 %v2144_v56 }
 0x4dc   :  { %2098 = vmatprep.subr.bf16.mxu0 %v2408_v30 }
 0x4df   :  { %2099 = vmatpush3.bf16.msra.mxu0 %v2145_v59  ;;  %v1516_v59 = vld [vmem:[#allocation10 + $0x10] sm:$0xff] }
 0x5ad   :  { %v1158_v10 = vpop.f32.mrb[16].mxu0 }
 0x5ae   :  { %v1159_v20 = vadd.f32 %v1937_v4, %v1158_v10  ;;  %v2078_v16 = vpop.f32.mrb[17].mxu0 }
 0x5af   :  { %v1161_v22 = vpop.f32.mrb[18].mxu0 }
 0x5b0   :  { %v1164_v23 = vmax.f32 %v1159_v20, 0.0  ;;  %v2079_v24 = vpop.f32.mrb[19].mxu0 }
 0x5b2   :  { %v1166_v63 = vpack.c.bf16 %v1164_v23, %v1164_v23 }
 0x5b4   :  { %2085 = vmatmul.mubr.msk.bf16.vlgmr.msra.gmra.mrb[16].mxu1 %vm225_vm0, %v1166_v63 }
 0x5b5   :  { %2089 = vmatpush3.bf16.msra.mxu1 %v2140_v21  ;;  %2092 = vmatprep.mubr.msk.bf16.mxu1 %vm2409_vm10, %v2408_v30  ;;  %v1957_v21 = vld [vmem:[%s3056_s7 + $0x1] ss:$0 sm:$0xff] }
 0x5b6   :  { %2090 = vmatprep.subr.bf16.mxu1 %v2408_v30 }
 0x5b9   :  { %2091 = vmatpush3.bf16.msra.mxu1 %v2141_v26 }
 0x5ba   :  { %2104 = vmatprep.subr.bf16.mxu1 %v2408_v30 }
 0x5bc   :  { %2093 = vmatmul.mubr.msk.bf16.vlgmr.msra.gmra.mrb[20].mxu1 %vm225_vm0, %v1167_v28 }
 0x5bd   :  { %2108 = vmatprep.mubr.msk.bf16.mxu1 %vm2409_vm10, %v2408_v30  ;;  %2105 = vmatpush3.bf16.msra.mxu1 %v2142_v55 }
 0x5be   :  { %2106 = vmatprep.subr.bf16.mxu1 %v2408_v30 }
 0x5c1   :  { %2107 = vmatpush3.bf16.msra.mxu1 %v2143_v19  ;;  %v1527_v19 = vld [vmem:[#allocation10 + $0x68] sm:$0xff] }
 0x5c4   :  { %2109 = vmatmul.mubr.msk.bf16.vlgmr.msra.gmra.mrb[24].mxu1 %vm225_vm0, %v1337_v60 }
 0x5c5   :  { %1731 = vmatprep.mubr.bf16.mxu1 %v2407_v34 }
 0x687   :  { %v1228_v29 = vpop.f32.mrb[16].mxu1 }
 0x688   :  { %v2086_v3 = vpop.f32.mrb[17].mxu1  ;;  %v1229_v14 = vadd.f32 %v1943_v42, %v1228_v29 }
 0x689   :  { %v1231_v7 = vpop.f32.mrb[18].mxu1 }
 0x68a   :  { %v2087_v40 = vpop.f32.mrb[19].mxu1 }
 0x68f   :  { %v1294_v8 = vpop.f32.mrb[20].mxu1 }
 0x690   :  { %v1295_v33 = vadd.f32 %v1947_v31, %v1294_v8  ;;  %v2094_v38 = vpop.f32.mrb[21].mxu1 }
 0x691   :  { %v1297_v39 = vpop.f32.mrb[22].mxu1 }
 0x692   :  { %1308 = vrot.lane.b32.xlu0 %v1295_v33, %s2399_s1  ;;  %v2095_v11 = vpop.f32.mrb[23].mxu1  ;;  %v1300_v45 = vadd.f32 %v1295_v33, %v1229_v14  ;;  %v2208_v39 = vld [vmem:[#allocation5 + $0x8] sm:$0xff] }
 0x694   :  { %v1951_v46 = vmul.f32 -1.442695, %v1300_v45  ;;  %v1514_v45 = vld [vmem:[#allocation10] sm:$0xff] }
 0x696   :  { %2178 = vpow2.f32 %v1951_v46  ;;  %v1518_v46 = vld [vmem:[#allocation10 + $0x20] sm:$0xff] }
 0x697   :  { %v1471_v10 = vpop.f32.mrb[24].mxu1 }
 0x698   :  { %v1472_v20 = vadd.f32 %v1962_v9, %v1471_v10  ;;  %v2110_v16 = vpop.f32.mrb[25].mxu1 }
 0x699   :  { %v1474_v22 = vpop.f32.mrb[26].mxu1 }
 0x69a   :  { %v2111_v23 = vpop.f32.mrb[27].mxu1 }
 0x6a0   :  { %v2179_v47 = vpop.eup %2178 }
 0x6a1   :  { %v1304_v17 = vadd.f32 1.0, %v2179_v47  ;;  %v1515_v47 = vld [vmem:[#allocation10 + $0x8] sm:$0xff] }
 0x6a3   :  { %2180 = vrcp.f32 %v1304_v17  ;;  %v1967_v17 = vcombine.low %v1514_v45, %v1518_v46 }
 0x6ad   :  { %v2181_v49 = vpop.eup %2180 }
 0x6ae   :  { %v1318_v13 = vsub.f32 1.0, %v2181_v49 }
 0x704   :  { %v1309_v51 = vpop.permute.xlu0 %1308 }
 0x705   :  { %v1311_v52 = vmul.f32 %v2181_v49, %v1309_v51  ;;  %v1519_v51 = vld [vmem:[#allocation10 + $0x28] sm:$0xff] }
 0x706   :  { %v1970_v55 = vcombine.high %v1515_v47, %v1519_v51 }
 0x707   :  { %1313 = vrot.lane.b32.xlu0 %v1311_v52, %s2399_s1  ;;  %v1522_v52 = vld [vmem:[#allocation10 + $0x40] sm:$0xff] }
 0x708   :  { %1699 = vmatprep.subr.bf16.mxu1 %v1970_v55 }
 0x779   :  { %v1314_v18 = vpop.permute.xlu0 %1313 }
 0x77a   :  { %v1316_v53 = vadd.f32 %v1314_v18, %v1229_v14  ;;  %v1526_v18 = vld [vmem:[#allocation10 + $0x60] sm:$0xff] }
 0x77b   :  { %v1976_v56 = vcombine.high %v1522_v52, %v1526_v18 }
 0x77c   :  { %2182 = vtanh.f32 %v1316_v53  ;;  %v1969_v53 = vcombine.low %v1515_v47, %v1519_v51 }
 0x77e   :  { %1700 = vmatpush1.bf16.msra.mxu1 %v1969_v53 }
 0x786   :  { %v2183_v57 = vpop.eup %2182 }
 0x787   :  { %1320 = vrot.lane.b32.xlu0 %v2183_v57, %s2410_s2  ;;  %v1523_v57 = vld [vmem:[#allocation10 + $0x48] sm:$0xff] }
 0x788   :  { %v1978_v60 = vcombine.high %v1523_v57, %v1527_v19  ;;  %v1977_v9 = vcombine.low %v1523_v57, %v1527_v19 }
 0x78a   :  { %1701 = vmatprep.subr.bf16.mxu1 %v1978_v60 }
 0x78b   :  { %1325 = vrot.lane.b32.xlu0 %v1165_v27, %s2405_s24  ;;  %1702 = vmatpush1.bf16.msra.mxu1 %v1977_v9 }
 0x78f   :  { %1485 = vrot.lane.b32.xlu0 %v1472_v20, %s2399_s1 }
 0x7f9   :  { %v1321_v61 = vpop.permute.xlu0 %1320 }
 0x7fa   :  { %v1323_v1 = vmul.f32 %v1321_v61, %v1318_v13  ;;  %v1520_v61 = vld [vmem:[#allocation10 + $0x30] sm:$0xff]  ;;  %v1517_v13 = vld [vmem:[#allocation10 + $0x18] sm:$0xff] }
 0x7fb   :  { %v1972_v10 = vcombine.high %v1516_v59, %v1520_v61 }
 0x7fd   :  { %v1326_v0 = vpop.permute.xlu0 %1325 }
 0x7fe   :  { %v1328_v15 = vmul.f32 %v2181_v49, %v1326_v0  ;;  %v1968_v49 = vcombine.high %v1514_v45, %v1518_v46  ;;  %v1521_v0 = vld [vmem:[#allocation10 + $0x38] sm:$0xff] }
 0x800   :  { %v2890_v4 = vadd.f32 %v1328_v15, %v1323_v1  ;;  %1658 = vmatprep.subr.bf16.mxu0 %v1968_v49  ;;  %v1975_v1 = vcombine.low %v1522_v52, %v1526_v18  ;;  %v1971_v15 = vcombine.low %v1516_v59, %v1520_v61 }
 0x801   :  { %v1486_v8 = vpop.permute.xlu0 %1485 }
 0x802   :  { %v1336_v30 = vpack.c.bf16 %v2890_v4, %v2890_v4 }
 0x804   :  { %1352 = vrot.lane.b32.xlu1 %v1336_v30, %s2410_s2  ;;  %v1973_v30 = vcombine.low %v1517_v13, %v1521_v0 }
 0x876   :  { %v1353_v24 = vpop.permute.xlu1 %1352 }
 0x877   :  { %2101 = vmatmul.mubr.msk.bf16.vlgmr.msra.gmra.mrb[20].mxu0 %vm225_vm0, %v1353_v24 }
 0x878   :  { %1690 = vmatprep.mubr.bf16.mxu0 %v2407_v34  ;;  %1659 = vmatpush1.bf16.msra.mxu0 %v1967_v17 }
 0x879   :  { %1660 = vmatprep.subr.bf16.mxu0 %v1976_v56 }
 0x87c   :  { %1661 = vmatpush1.bf16.msra.mxu0 %v1975_v1 }
 0x87d   :  { %1740 = vmatprep.subr.bf16.mxu0 %v1972_v10 }
 0x94a   :  { %v1403_v63 = vpop.f32.mrb[20].mxu0 }
 0x94b   :  { %v1404_v26 = vadd.f32 %v1957_v21, %v1403_v63  ;;  %v2102_v27 = vpop.f32.mrb[21].mxu0 }
 0x94c   :  { %v1406_v28 = vpop.f32.mrb[22].mxu0  ;;  %v1524_v27 = vld [vmem:[#allocation10 + $0x50] sm:$0xff] }
 0x94d   :  { %v1477_v29 = vadd.f32 %v1472_v20, %v1404_v26  ;;  %v2103_v3 = vpop.f32.mrb[23].mxu0  ;;  %v1974_v20 = vcombine.high %v1517_v13, %v1521_v0  ;;  %v1528_v28 = vld [vmem:[#allocation10 + $0x70] sm:$0xff] }
 0x94e   :  { %v1529_v3 = vld [vmem:[#allocation10 + $0x78] sm:$0xff] }
 0x94f   :  { %v1966_v7 = vmul.f32 -1.442695, %v1477_v29  ;;  %1781 = vmatprep.subr.bf16.mxu1 %v1974_v20  ;;  %v1525_v29 = vld [vmem:[#allocation10 + $0x58] sm:$0xff] }
 0x951   :  { %2184 = vpow2.f32 %v1966_v7  ;;  %v1980_v7 = vcombine.high %v1524_v27, %v1528_v28 }
 0x95b   :  { %v2185_v40 = vpop.eup %2184 }
 0x95c   :  { %v1481_v31 = vadd.f32 1.0, %v2185_v40  ;;  %v1982_v40 = vcombine.high %v1525_v29, %v1529_v3 }
 0x95e   :  { %2186 = vrcp.f32 %v1481_v31 }
 0x968   :  { %v2187_v33 = vpop.eup %2186 }
 0x969   :  { %v1488_v38 = vmul.f32 %v2187_v33, %v1486_v8  ;;  %v1495_v22 = vsub.f32 1.0, %v2187_v33  ;;  %v1981_v8 = vcombine.low %v1525_v29, %v1529_v3 }
 0x96b   :  { %1490 = vrot.lane.b32.xlu1 %v1488_v38, %s2399_s1  ;;  %v1530_v38 = vld [vmem:[%s3059_s10] sm:$0xff]  ;;  %s2411_s10 = smov [#allocation12]  }
 0x96c   :  { %v1543_v45 = vrot.slane %v1530_v38, %v2650_v36  ;;  %v1551_v46 = vrot.slane %v1530_v38, %v2659_v43  ;;  %v1559_v47 = vrot.slane %v1530_v38, %v2667_v54  ;;  %v1539_v17 = vrot.slane %v1530_v38, %v2647_v35  ;;  %s1898_s1 = sshll.u32 %s2411_s10, 4  ;;  %s1899_s1 = int_to_ptr.vmem [resolvable:$true] %s1898_s1 }
 0x96d   :  { %v1547_v49 = vrot.slane %v1530_v38, %v2653_v37  ;;  %v1555_v51 = vrot.slane %v1530_v38, %v2663_v50  ;;  %v1563_v52 = vrot.slane %v1530_v38, %v2671_v58  ;;  %s2319_s30 = scalar_lea.vmem %s1899_s1, 256  ;;  %p2324_p13 = scmp.lt.s32.totalorder %s1899_s1, %s1899_s1 }
 0x96e   :  { %p2320_p12 = scmp.ne.s32.totalorder %s1899_s1, %s2319_s30  ;;  %p2325_p0 = scmp.lt.s32.totalorder %s2319_s30, %s2319_s30 }
 0x96f   :  { %1502 = vrot.lane.b32.xlu1 %v2208_v39, %s2405_s24  ;;  %s2412_s24 = smov [#allocation14]  }
 0x970   :  { %s1911_s9 = sshll.u32 %s2412_s24, 4  ;;  %p2326_p1 = por %p2325_p0, %p2324_p13  ;;  %s1912_s9 = int_to_ptr.vmem [resolvable:$true] %s1911_s9 }
 0x972   :  { %p2327_p2 = pnand %p2326_p1, %p2320_p12 }
 0x9dd   :  { %v1491_v11 = vpop.permute.xlu1 %1490 }
 0x9de   :  { %v1493_v42 = vadd.f32 %v1491_v11, %v1404_v26 }
 0x9e0   :  { %2188 = vtanh.f32 %v1493_v42 }
 0x9e1   :  { %v1503_v16 = vpop.permute.xlu1 %1502 }
 0x9e2   :  { %v1505_v24 = vmul.f32 %v2187_v33, %v1503_v16 }
 0x9ea   :  { %v2189_v14 = vpop.eup %2188 }
 0x9eb   :  { %1497 = vrot.lane.b32.xlu0 %v2189_v14, %s2410_s2 }
 0xa5d   :  { %v1498_v23 = vpop.permute.xlu0 %1497 }
 0xa5e   :  { %v1500_v21 = vmul.f32 %v1498_v23, %v1495_v22 }
 0xa60   :  { %v2907_v63 = vadd.f32 %v1505_v24, %v1500_v21 }
 0xa62   :  { %v1513_v26 = vpack.c.bf16 %v2907_v63, %v2907_v63 }
 0xa64   :  { %1573 = vrot.lane.b32.xlu0 %v1513_v26, %s2410_s2 }
 0xa68   :  { %517 = vperm.xlu0 %2132, %v2722_v2   ;;  %v1979_v2 = vcombine.low %v1524_v27, %v1528_v28 }
 0xa6c   :  { %526 = vperm.xlu0 %2132, %v2736_v62  }
 0xa70   :  { %532 = vperm.xlu0 %2132, %v2761_v41  }
 0xa74   :  { %538 = vperm.xlu0 %2132, %v2771_v48  }
 0xad6   :  { %v1574_v31 = vpop.permute.xlu0 %1573 }
 0xad7   :  { %1983 = vmatmul.mubr.msk.bf16.vlgmr.msra.gmra.mrb[24].mxu0 %vm225_vm0, %v1574_v31  ;;  %1984 = vmatmul.mubr.msk.bf16.vlgmr.msra.gmra.mrb[28].mxu1 %vm225_vm0, %v1574_v31 }
 0xad8   :  { %1741 = vmatpush1.bf16.msra.mxu0 %v1971_v15  ;;  %1782 = vmatpush1.bf16.msra.mxu1 %v1973_v30 }
 0xad9   :  { %1742 = vmatprep.subr.bf16.mxu0 %v1980_v7  ;;  %1783 = vmatprep.subr.bf16.mxu1 %v1982_v40 }
 0xada   :  { %1772 = vmatprep.mubr.bf16.mxu0 %v2407_v34  ;;  %1813 = vmatprep.mubr.bf16.mxu1 %v2407_v34  ;;  %v1535_v34 = vrot.slane %v1530_v38, %v2567_v12 }
 0xadc   :  { %1743 = vmatpush1.bf16.msra.mxu0 %v1979_v2  ;;  %1784 = vmatpush1.bf16.msra.mxu1 %v1981_v8 }
 0xadf   :  { %1985 = vmatmul.mubr.msk.bf16.vlgmr.msra.gmra.mrb[28].mxu0 %vm225_vm0, %v1574_v31  ;;  %1986 = vmatmul.mubr.msk.bf16.vlgmr.msra.gmra.mrb[32].mxu1 %vm225_vm0, %v1574_v31 }
 0xae7   :  { %v518_v10 = vpop.permute.xlu0 %517 }
 0xae8   :  { %v543_v29 = vrot.slane %v518_v10, %v2553_v6 }
 0xbaa   :  { %v1692_v62 = vpop.f32.mrb[24].mxu0  ;;  %v1733_v41 = vpop.f32.mrb[28].mxu1 }
 0xbab   :  { %v1694_v48 = vpop.f32.mrb[25].mxu0  ;;  %v1735_v33 = vpop.f32.mrb[29].mxu1  ;;  %v2933_v55 = vadd.f32 %v1692_v62, %v1535_v34  ;;  %v2935_v56 = vadd.f32 %v1733_v41, %v1543_v45 }
 0xbac   :  { %v1696_v39 = vpop.f32.mrb[26].mxu0  ;;  %v1737_v11 = vpop.f32.mrb[30].mxu1  ;;  %v2941_v57 = vadd.f32 %v1694_v48, %v1539_v17  ;;  %v2943_v35 = vadd.f32 %v1735_v33, %v1547_v49 }
 0xbad   :  { %v1697_v42 = vpop.f32.mrb[27].mxu0  ;;  %v1738_v14 = vpop.f32.mrb[31].mxu1 }
 0xbb2   :  { %v1774_v18 = vpop.f32.mrb[28].mxu0  ;;  %v1815_v53 = vpop.f32.mrb[32].mxu1 }
 0xbb3   :  { %v2937_v12 = vadd.f32 %v1774_v18, %v1551_v46  ;;  %v2939_v36 = vadd.f32 %v1815_v53, %v1559_v47  ;;  %v1776_v43 = vpop.f32.mrb[29].mxu0  ;;  %v1817_v54 = vpop.f32.mrb[33].mxu1 }
 0xbb4   :  { %v2945_v37 = vadd.f32 %v1776_v43, %v1555_v51  ;;  %v2947_v50 = vadd.f32 %v1817_v54, %v1563_v52  ;;  %v1778_v58 = vpop.f32.mrb[30].mxu0  ;;  %v1819_v19 = vpop.f32.mrb[34].mxu1 }
 0xbb5   :  { %v1822_v59 = vmax.f32 %v2933_v55, %v2937_v12  ;;  %v1824_v60 = vmax.f32 %v2935_v56, %v2939_v36  ;;  %v1779_v61 = vpop.f32.mrb[31].mxu0  ;;  %v1820_v13 = vpop.f32.mrb[35].mxu1 }
 0xbb6   :  { %v1823_v0 = vmax.f32 %v2941_v57, %v2945_v37  ;;  %v1825_v1 = vmax.f32 %v2943_v35, %v2947_v50 }
 0xbb8   :  { %v1826_v15 = vmax.f32 %v1822_v59, %v1823_v0  ;;  %v1827_v30 = vmax.f32 %v1824_v60, %v1825_v1 }
 0xbba   :  { %v1828_v9 = vmax.f32 %v1826_v15, %v1827_v30 }
 0xbbc   :  { %1829 = vmax.xlane.f32.xlu1 %v1828_v9 }
 0xbcd   :  { %520 = vperm.xlu1 %2131, %v2725_v5  }
 0xbd1   :  { %523 = vperm.xlu1 %2131, %v2733_v25  }
 0xbd5   :  { %529 = vperm.xlu1 %2131, %v2751_v32   ;;  %v527_v32 = vpop.permute.xlu0 %526 }
 0xbd6   :  { %v555_v33 = vrot.slane %v527_v32, %v2553_v6 }
 0xbd9   :  { %535 = vperm.xlu1 %2131, %v2766_v44   ;;  %v533_v31 = vpop.permute.xlu0 %532 }
 0xbda   :  { %v563_v17 = vrot.slane %v533_v31, %v2553_v6 }
 0xbdd   :  { %1331 = vrot.lane.b32.xlu1 %v2890_v4, %s2410_s2  ;;  %v539_v45 = vpop.permute.xlu0 %538 }
 0xbde   :  { %v571_v53 = vrot.slane %v539_v45, %v2553_v6 }
 0xc49   :  { %v2963_v20 = vpop.xlane.xlu1 %1829 }
 0xc4a   :  { %v1831_v16 = vsub.f32 %v2933_v55, %v2963_v20  ;;  %v1832_v22 = vsub.f32 %v2941_v57, %v2963_v20  ;;  %v1833_v5 = vsub.f32 %v2935_v56, %v2963_v20  ;;  %v1834_v25 = vsub.f32 %v2943_v35, %v2963_v20 }
 0xc4b   :  { %v1835_v4 = vsub.f32 %v2937_v12, %v2963_v20  ;;  %v1836_v27 = vsub.f32 %v2945_v37, %v2963_v20  ;;  %v1837_v7 = vsub.f32 %v2939_v36, %v2963_v20  ;;  %v1838_v62 = vsub.f32 %v2947_v50, %v2963_v20 }
 0xc4c   :  { %v1839_v44 = vmul.f32 1.442695, %v1831_v16  ;;  %v1841_v23 = vmul.f32 1.442695, %v1832_v22  ;;  %v1843_v21 = vmul.f32 1.442695, %v1833_v5 }
 0xc4d   :  { %v521_v24 = vpop.permute.xlu1 %520  ;;  %v1845_v28 = vmul.f32 1.442695, %v1834_v25  ;;  %v1847_v40 = vmul.f32 1.442695, %v1835_v4  ;;  %v1849_v41 = vmul.f32 1.442695, %v1836_v27 }
 0xc4e   :  { %2190 = vpow2.f32 %v1839_v44  ;;  %v547_v26 = vrot.slane %v521_v24, %v2553_v6  ;;  %v1851_v39 = vmul.f32 1.442695, %v1837_v7  ;;  %v1853_v14 = vmul.f32 1.442695, %v1838_v62 }
 0xc4f   :  { %2192 = vpow2.f32 %v1841_v23 }
 0xc50   :  { %2194 = vpow2.f32 %v1843_v21  ;;  %v572_v8 = vsel %vm292_vm1, %v547_v26, %v543_v29 }
 0xc51   :  { %v524_v3 = vpop.permute.xlu1 %523  ;;  %2196 = vpow2.f32 %v1845_v28 }
 0xc52   :  { %v551_v2 = vrot.slane %v524_v3, %v2553_v6  ;;  %2198 = vpow2.f32 %v1847_v40 }
 0xc53   :  { %2200 = vpow2.f32 %v1849_v41 }
 0xc54   :  { %v573_v48 = vsel %vm294_vm2, %v551_v2, %v572_v8  ;;  %2202 = vpow2.f32 %v1851_v39 }
 0xc55   :  { %v530_v38 = vpop.permute.xlu1 %529  ;;  %v574_v42 = vsel %vm296_vm3, %v555_v33, %v573_v48  ;;  %2204 = vpow2.f32 %v1853_v14 }
 0xc56   :  { %v559_v11 = vrot.slane %v530_v38, %v2553_v6 }
 0xc58   :  { %v2191_v34 = vpop.eup %2190  ;;  %v575_v46 = vsel %vm298_vm4, %v559_v11, %v574_v42 }
 0xc59   :  { %v2193_v47 = vpop.eup %2192  ;;  %v536_v49 = vpop.permute.xlu1 %535  ;;  %v576_v43 = vsel %vm300_vm5, %v563_v17, %v575_v46 }
 0xc5a   :  { %v567_v51 = vrot.slane %v536_v49, %v2553_v6  ;;  %v1855_v52 = vadd.f32 %v2193_v47, %v2191_v34  ;;  %v2195_v18 = vpop.eup %2194 }
 0xc5b   :  { %v2197_v19 = vpop.eup %2196 }
 0xc5c   :  { %v577_v54 = vsel %vm302_vm6, %v567_v51, %v576_v43  ;;  %v1856_v58 = vadd.f32 %v2195_v18, %v1855_v52  ;;  %v2199_v13 = vpop.eup %2198 }
 0xc5d   :  { %v1332_v59 = vpop.permute.xlu1 %1331  ;;  %v578_v60 = vsel %vm304_vm7, %v571_v53, %v577_v54  ;;  %v2201_v1 = vpop.eup %2200 }
 0xc5e   :  { %1334 = vst.msk [vmem:[#allocation12] sm:$0xff] %vm225_vm0, %v1332_v59  ;;  %v1857_v61 = vadd.f32 %v2197_v19, %v1856_v58  ;;  %v2203_v6 = vpop.eup %2202 }
 0xc5f   :  { %580 = vst.msk [vmem:[#allocation14] sm:$0xff] %vm307_vm8, %v578_v60  ;;  %v2205_v9 = vpop.eup %2204 }
 0xc60   :  { %v1858_v0 = vadd.f32 %v2199_v13, %v1857_v61 }
 0xc62   :  { %v1859_v15 = vadd.f32 %v2201_v1, %v1858_v0 }
 0xc64   :  { %v1860_v30 = vadd.f32 %v2203_v6, %v1859_v15 }
 0xc66   :  { %v1861_v10 = vadd.f32 %v2205_v9, %v1860_v30 }
 0xc68   :  { %1862 = vadd.xlane.f32.xlu0 %v1861_v10 }
 0xc7e   :  { %1508 = vrot.lane.b32.xlu0 %v2907_v63, %s2410_s2 }
 0xcf5   :  { %v1863_v16 = vpop.xlane.xlu0 %1862 }
 0xcf6   :  { %2206 = vlog2.f32 %v1863_v16 }
 0xcf9   :  { %v1509_v22 = vpop.permute.xlu0 %1508 }
 0xcfa   :  { %1512 = vst.msk [vmem:[#allocation12 + $0x8] sm:$0xff] %vm225_vm0, %v1509_v22 }
 0xcfb   :  { %2330 = shalt.err (!%p2327_p2)
}
 0xcfc   :  { %s2331_s3 = scalar_lea.hbm %s3061_s12, 256 }
 0xcfd   :  { %p2332_p3 = scmp.ne.s32.totalorder %s3061_s12, %s2331_s3  ;;  %p2335_p4 = scmp.lt.u32.totalorder %s2331_s3, %s3061_s12 }
 0xcff   :  { %p2337_p5 = pnand %p2335_p4, %p2332_p3 }
 0xd01   :  { %2340 = shalt.err (!%p2337_p5)
}
 0xd02   :  { %1904 = dma.vmem_to_hbm [thread:$0]  %s1899_s1, 256, %s3061_s12, [#allocation13], %s2396_s18, %s2396_s18, %s2397_s19  }
 0xd03   :  { %s2341_s17 = scalar_lea.vmem %s1912_s9, 128  ;;  %p2346_p7 = scmp.lt.s32.totalorder %s1912_s9, %s1912_s9 }
 0xd04   :  { %p2342_p6 = scmp.ne.s32.totalorder %s1912_s9, %s2341_s17  ;;  %p2347_p8 = scmp.lt.s32.totalorder %s2341_s17, %s2341_s17 }
 0xd06   :  { %p2348_p9 = por %p2347_p8, %p2346_p7 }
 0xd08   :  { %p2349_p10 = pnand %p2348_p9, %p2342_p6 }
 0xd0a   :  { %2352 = shalt.err (!%p2349_p10)
}
 0xd0b   :  { %s2353_s25 = scalar_lea.hbm %s3062_s13, 128 }
 0xd0c   :  { %p2354_p11 = scmp.ne.s32.totalorder %s3062_s13, %s2353_s25  ;;  %p2357_p12 = scmp.lt.u32.totalorder %s2353_s25, %s3062_s13 }
 0xd0e   :  { %p2359_p13 = pnand %p2357_p12, %p2354_p11 }
 0xd10   :  { %2362 = shalt.err (!%p2359_p13)
}
 0xd11   :  { %1914 = dma.vmem_to_hbm [thread:$0]  %s1912_s9, 128, %s3062_s13, [#allocation13]   ;;  %v2207_v63 = vpop.eup %2206 }
 0xd12   :  { %v1865_v5 = vmul.f32 0.6931472, %v2207_v63  ;;  %s2413_s19 = smov [#allocation11]  }
 0xd13   :  { %s1889_s28 = sshll.u32 %s2413_s19, 4  ;;  %s1890_s28 = int_to_ptr.vmem [resolvable:$true] %s1889_s28 }
 0xd14   :  { %v1866_v25 = vadd.f32 %v1865_v5, %v2963_v20  ;;  %s2363_s13 = scalar_lea.vmem %s1890_s28, 1024  ;;  %p2368_p1 = scmp.lt.s32.totalorder %s1890_s28, %s1890_s28 }
 0xd15   :  { %p2364_p0 = scmp.ne.s32.totalorder %s1890_s28, %s2363_s13  ;;  %p2369_p2 = scmp.lt.s32.totalorder %s2363_s13, %s2363_s13 }
 0xd16   :  { %v1867_v32 = vsub.f32 %v2933_v55, %v1866_v25  ;;  %v1868_v44 = vsub.f32 %v2941_v57, %v1866_v25  ;;  %v1869_v23 = vsub.f32 %v2935_v56, %v1866_v25  ;;  %v1870_v24 = vsub.f32 %v2943_v35, %v1866_v25 }
 0xd17   :  { %v1871_v4 = vsub.f32 %v2937_v12, %v1866_v25  ;;  %v1872_v21 = vsub.f32 %v2945_v37, %v1866_v25  ;;  %v1873_v26 = vsub.f32 %v2939_v36, %v1866_v25  ;;  %v1874_v27 = vsub.f32 %v2947_v50, %v1866_v25  ;;  %p2370_p3 = por %p2369_p2, %p2368_p1 }
 0xd18   :  { %1875 = vst [vmem:[#allocation11] sm:$0xff] %v1867_v32  ;;  %1876 = vst [vmem:[#allocation11 + $0x8] sm:$0xff] %v1868_v44 }
 0xd19   :  { %1877 = vst [vmem:[#allocation11 + $0x10] sm:$0xff] %v1869_v23  ;;  %1878 = vst [vmem:[#allocation11 + $0x18] sm:$0xff] %v1870_v24  ;;  %p2371_p4 = pnand %p2370_p3, %p2364_p0 }
 0xd1a   :  { %1879 = vst [vmem:[#allocation11 + $0x20] sm:$0xff] %v1871_v4  ;;  %1880 = vst [vmem:[#allocation11 + $0x28] sm:$0xff] %v1872_v21 }
 0xd1b   :  { %1881 = vst [vmem:[#allocation11 + $0x30] sm:$0xff] %v1873_v26  ;;  %1882 = vst [vmem:[#allocation11 + $0x38] sm:$0xff] %v1874_v27 }
 0xd1c   :  { %2374 = shalt.err (!%p2371_p4)
}
 0xd1d   :  { %s2375_s8 = scalar_lea.hbm %s3060_s11, 1024 }
 0xd1e   :  { %p2376_p5 = scmp.ne.s32.totalorder %s3060_s11, %s2375_s8  ;;  %p2379_p6 = scmp.lt.u32.totalorder %s2375_s8, %s3060_s11 }
 0xd20   :  { %p2381_p7 = pnand %p2379_p6, %p2376_p5 }
 0xd22   :  { %2384 = shalt.err (!%p2381_p7)
}
 0xd23   :  { %1892 = dma.vmem_to_hbm [thread:$0]  %s1890_s28, 1024, %s3060_s11, [#allocation4]  }
 0xd24   :  { %2391 = dma.done.wait [#allocation4], 1024  }
 0xd25   :  { %2392 = vsyncadd [#allocation4], 4294966272 }
 0xd26   :  { %2393 = dma.done.wait [#allocation13], 384  }
 0xd27   :  { %2394 = vsyncadd [#allocation13], 4294966912 }
 0xd28   :  { %1924 = vsyncpa [#allocation3], 1 }
 0xd29   :  { %1925 = vsyncpa [#allocation6], 1 }
 0xd2a   :  { %1926 = vsyncpa [#allocation9], 1 }
 0xd2b   :  { %1927 = vsyncpa [#allocation4], 1 }
 0xd2c   :  { %1928 = vsyncpa [#allocation13], 1 }

</bundles_post_ra>
